<compile_context>
chip_gen: v7x
topology: tpu7x:2x2x1
jax: 0.10.0
libtpu: 0.0.40
codegen_flags: <defaults>
</compile_context>

<pallas_src>
import math

import jax
import jax.numpy as jnp
from jax import lax
from jax.experimental import pallas as pl
from jax.experimental.pallas import tpu as pltpu

# ---- tiny GPT-2 config ----
BATCH = 2
SEQ = 8
HIDDEN = 32
N_HEAD = 2
HEAD_DIM = HIDDEN // N_HEAD
N_LAYER = 2
VOCAB = 64
VOCAB_PAD = 128                 # lane-dense logits store; sliced back to VOCAB in the wrapper
MLP_DIM = 4 * HIDDEN
TOKENS = BATCH * SEQ            # batch folded into the matmul row dimension
LN_EPS = 1e-5
NEG_INF = -1e9

# lane offsets inside the packed weight slab w_a = [W_qkv | W_o | W_fc]  -> 256 lanes
_QKV_OFF = 0
_WO_OFF = 3 * HIDDEN            # 96
_WFC_OFF = 4 * HIDDEN           # 128
_WA_LANES = _WFC_OFF + MLP_DIM  # 256


# ---------------------------------------------------------------------------
# in-kernel helpers (fp32 vector math on every generation)
# ---------------------------------------------------------------------------
def _layer_norm(x, g, b):
    mu = jnp.mean(x, axis=-1, keepdims=True)
    var = jnp.mean((x - mu) ** 2, axis=-1, keepdims=True)
    return (x - mu) * lax.rsqrt(var + LN_EPS) * g + b


def _gelu_new(x):
    # GPT-2 "gelu_new" (tanh approximation) -> EUP tanh
    c = math.sqrt(2.0 / math.pi)
    return 0.5 * x * (1.0 + jnp.tanh(c * (x + 0.044715 * x * x * x)))


# ---------------------------------------------------------------------------
# fused kernel: all transformer blocks + final LN + tied lm head (single invocation, no grid)
# ---------------------------------------------------------------------------
def _gpt2_kernel(x0_ref, bias_ref, wa_ref, wpr_ref, lnp_ref, wte_ref, o_ref):
    h = x0_ref[...]                         # (TOKENS, D) fp32, resident for the whole kernel
    bias = bias_ref[...]                    # (B, S, S) fp32 causal+padding bias (precomputed, hoisted)
    scale = 1.0 / math.sqrt(HEAD_DIM)

    for layer in range(N_LAYER):            # statically unrolled
        wa = wa_ref[layer]                  # (D, 256) bf16 packed [W_qkv | W_o | W_fc]
        w_qkv = wa[:, _QKV_OFF:_WO_OFF]     # (32, 96)
        w_o = wa[:, _WO_OFF:_WFC_OFF]       # (32, 32)
        w_fc = wa[:, _WFC_OFF:_WA_LANES]    # (32, 128)
        w_pr = wpr_ref[layer]               # (128, 32) bf16
        lnp = lnp_ref[layer]                # (8, 128) fp32 packed LN params + biases
        ln1_g, ln1_b = lnp[0:1, 0:HIDDEN], lnp[0:1, HIDDEN:2 * HIDDEN]
        ln2_g, ln2_b = lnp[0:1, 2 * HIDDEN:3 * HIDDEN], lnp[0:1, 3 * HIDDEN:4 * HIDDEN]
        b_qkv = lnp[1:2, 0:3 * HIDDEN]
        b_o = lnp[1:2, 3 * HIDDEN:4 * HIDDEN]
        b_fc = lnp[2:3, 0:MLP_DIM]
        b_pr = lnp[3:4, 0:HIDDEN]

        # ---- attention (pre-LN): one fused QKV matmul, one output-projection matmul ----
        a16 = _layer_norm(h, ln1_g, ln1_b).astype(jnp.bfloat16)
        qkv = jnp.dot(a16, w_qkv, preferred_element_type=jnp.float32) + b_qkv   # (TOKENS, 3D)

        ctx_heads = []
        for hd in range(N_HEAD):            # head split = static lane slices of the fused QKV output
            lo, hi = hd * HEAD_DIM, (hd + 1) * HEAD_DIM
            q = qkv[:, lo:hi].reshape(BATCH, SEQ, HEAD_DIM)
            k = qkv[:, HIDDEN + lo:HIDDEN + hi].reshape(BATCH, SEQ, HEAD_DIM)
            v = qkv[:, 2 * HIDDEN + lo:2 * HIDDEN + hi].reshape(BATCH, SEQ, HEAD_DIM)
            s = jnp.einsum('bqd,bkd->bqk', q, k,
                           preferred_element_type=jnp.float32) * scale + bias
            s = s - jnp.max(s, axis=-1, keepdims=True)
            p = jnp.exp(s)
            p = p / jnp.sum(p, axis=-1, keepdims=True)      # exact softmax (matches torch.softmax)
            ctx_heads.append(jnp.einsum('bqk,bkd->bqd', p, v,
                                        preferred_element_type=jnp.float32)
                             .reshape(TOKENS, HEAD_DIM))
        ctx = jnp.concatenate(ctx_heads, axis=-1)                               # (TOKENS, D)
        attn = jnp.dot(ctx.astype(jnp.bfloat16), w_o,
                       preferred_element_type=jnp.float32) + b_o
        h = h + attn

        # ---- MLP (pre-LN) ----
        m_in = _layer_norm(h, ln2_g, ln2_b).astype(jnp.bfloat16)
        ff = jnp.dot(m_in, w_fc, preferred_element_type=jnp.float32) + b_fc
        ff = _gelu_new(ff).astype(jnp.bfloat16)
        h = h + jnp.dot(ff, w_pr, preferred_element_type=jnp.float32) + b_pr

    # ---- final LN + tied lm head: single lane-dense (TOKENS, 128) fp32 store ----
    lnf = lnp_ref[0]
    lnf_g, lnf_b = lnf[4:5, 0:HIDDEN], lnf[4:5, HIDDEN:2 * HIDDEN]
    fin = _layer_norm(h, lnf_g, lnf_b).astype(jnp.bfloat16)
    o_ref[...] = jnp.dot(fin, wte_ref[...], preferred_element_type=jnp.float32)


def gpt2_forward_fused(x0, bias, w_a, w_pr, lnp, wte_t_pad):
    vmem = lambda: pl.BlockSpec(memory_space=pltpu.MemorySpace.VMEM)
    return pl.pallas_call(
        _gpt2_kernel,
        out_shape=jax.ShapeDtypeStruct((TOKENS, VOCAB_PAD), jnp.float32),
        in_specs=[vmem() for _ in range(6)],
        out_specs=vmem(),
    )(x0, bias, w_a, w_pr, lnp, wte_t_pad)


# ---------------------------------------------------------------------------
# parameter init (deterministic, GPT-2-style N(0, 0.02)); weights packed into lane-dense slabs
# ---------------------------------------------------------------------------
def init_params(key):
    keys = iter(jax.random.split(key, 8))
    nrm = lambda shape: 0.02 * jax.random.normal(next(keys), shape, jnp.float32)
    L, D, M = N_LAYER, HIDDEN, MLP_DIM

    wte = nrm((VOCAB, D))
    wpe = nrm((SEQ, D))
    w_qkv = nrm((L, D, 3 * D))
    w_o = nrm((L, D, D))
    w_fc = nrm((L, D, M))
    w_pr = nrm((L, M, D))

    # packed matmul slab: [W_qkv | W_o | W_fc] along lanes -> (L, 32, 256)
    w_a = jnp.concatenate([w_qkv, w_o, w_fc], axis=-1).astype(jnp.bfloat16)

    # packed LN/bias slab (L, 8, 128) fp32:
    #   row 0: ln1_g | ln1_b | ln2_g | ln2_b     (32 lanes each)
    #   row 1: b_qkv (96) | b_o (32)
    #   row 2: b_fc (128)
    #   row 3: b_pr (32)
    #   row 4 (layer 0 only): lnf_g (32) | lnf_b (32)
    lnp = jnp.zeros((L, 8, 128), jnp.float32)
    lnp = lnp.at[:, 0, 0:D].set(1.0)          # ln1 gamma
    lnp = lnp.at[:, 0, 2 * D:3 * D].set(1.0)  # ln2 gamma
    lnp = lnp.at[0, 4, 0:D].set(1.0)          # final LN gamma (all betas/biases zero, GPT-2 style)

    return {"wte": wte, "wpe": wpe,
            "w_a": w_a, "w_pr": w_pr.astype(jnp.bfloat16), "lnp": lnp}


# ---------------------------------------------------------------------------
# forward: equivalent of TransformerPolicyNetwork.forward(input_ids, attention_mask)
# ---------------------------------------------------------------------------
@jax.jit
def forward(params, input_ids, attention_mask):
    B, S = input_ids.shape
    # glue (XLA): embedding gather + positional add, layer-invariant attention bias,
    # tied/padded lm-head weight
    x = params["wte"][input_ids] + params["wpe"][None, :S, :]                      # (B, S, D)
    x0 = x.reshape(B * S, HIDDEN).astype(jnp.float32)                              # batch folded

    causal = jnp.where(jnp.tril(jnp.ones((S, S), dtype=bool)), 0.0, NEG_INF)       # (S, S)
    key_bias = jnp.where(attention_mask > 0, 0.0, NEG_INF)                         # (B, S)
    bias = (key_bias[:, None, :] + causal[None, :, :]).astype(jnp.float32)         # (B, S, S)

    wte_t_pad = jnp.zeros((HIDDEN, VOCAB_PAD), jnp.bfloat16)
    wte_t_pad = wte_t_pad.at[:, :VOCAB].set(params["wte"].T.astype(jnp.bfloat16))

    logits_pad = gpt2_forward_fused(x0, bias, params["w_a"], params["w_pr"],
                                    params["lnp"], wte_t_pad)                      # (B*S, 128)
    return logits_pad.reshape(B, S, VOCAB_PAD)[:, :, :VOCAB]                       # (B, S, V)


if __name__ == "__main__":
    key = jax.random.PRNGKey(0)
    pkey, ikey = jax.random.split(key)
    params = init_params(pkey)

    input_ids = jax.random.randint(ikey, (BATCH, SEQ), 0, VOCAB, dtype=jnp.int32)
    attention_mask = jnp.ones((BATCH, SEQ), jnp.int32).at[1, 6:].set(0)  # pad tail of 2nd example

    logits = forward(params, input_ids, attention_mask)
    jax.block_until_ready(logits)

    assert logits.shape == (BATCH, SEQ, VOCAB)
    assert bool(jnp.all(jnp.isfinite(logits)))
    print("KERNEL_OK")
</pallas_src>

<mosaic_0001>
module attributes {stable_mosaic.version = 11 : i64} {
  func.func @_gpt2_kernel(%arg0: memref<16x32xf32, #tpu.memory_space<vmem>>, %arg1: memref<2x8x8xf32, #tpu.memory_space<vmem>>, %arg2: memref<2x32x256xbf16, #tpu.memory_space<vmem>>, %arg3: memref<2x128x32xbf16, #tpu.memory_space<vmem>>, %arg4: memref<2x8x128xf32, #tpu.memory_space<vmem>>, %arg5: memref<32x128xbf16, #tpu.memory_space<vmem>>, %arg6: memref<16x128xf32, #tpu.memory_space<vmem>>) attributes {dimension_semantics = [], scalar_prefetch = 0 : i64, scratch_operands = 0 : i64, tpu.core_type = #tpu.core_type<tc>} {
    %c0 = arith.constant 0 : index
    %c0_0 = arith.constant 0 : index
    %0 = vector.load %arg0[%c0, %c0_0] : memref<16x32xf32, #tpu.memory_space<vmem>>, vector<16x32xf32>
    %c0_1 = arith.constant 0 : index
    %c0_2 = arith.constant 0 : index
    %c0_3 = arith.constant 0 : index
    %1 = vector.load %arg1[%c0_1, %c0_2, %c0_3] : memref<2x8x8xf32, #tpu.memory_space<vmem>>, vector<2x8x8xf32>
    %c0_4 = arith.constant 0 : index
    %c0_5 = arith.constant 0 : index
    %c0_6 = arith.constant 0 : index
    %2 = vector.load %arg2[%c0_4, %c0_5, %c0_6] : memref<2x32x256xbf16, #tpu.memory_space<vmem>>, vector<1x32x256xbf16>
    %3 = vector.shape_cast %2 : vector<1x32x256xbf16> to vector<32x256xbf16>
    %4 = vector.extract_strided_slice %3 {offsets = [0, 0], sizes = [32, 96], strides = [1, 1]} : vector<32x256xbf16> to vector<32x96xbf16>
    %5 = vector.extract_strided_slice %3 {offsets = [0, 96], sizes = [32, 32], strides = [1, 1]} : vector<32x256xbf16> to vector<32x32xbf16>
    %6 = vector.extract_strided_slice %3 {offsets = [0, 128], sizes = [32, 128], strides = [1, 1]} : vector<32x256xbf16> to vector<32x128xbf16>
    %c0_7 = arith.constant 0 : index
    %c0_8 = arith.constant 0 : index
    %c0_9 = arith.constant 0 : index
    %7 = vector.load %arg3[%c0_7, %c0_8, %c0_9] : memref<2x128x32xbf16, #tpu.memory_space<vmem>>, vector<1x128x32xbf16>
    %8 = vector.shape_cast %7 : vector<1x128x32xbf16> to vector<128x32xbf16>
    %c0_10 = arith.constant 0 : index
    %c0_11 = arith.constant 0 : index
    %c0_12 = arith.constant 0 : index
    %9 = vector.load %arg4[%c0_10, %c0_11, %c0_12] : memref<2x8x128xf32, #tpu.memory_space<vmem>>, vector<1x8x128xf32>
    %10 = vector.shape_cast %9 : vector<1x8x128xf32> to vector<8x128xf32>
    %11 = vector.extract_strided_slice %10 {offsets = [0, 0], sizes = [1, 32], strides = [1, 1]} : vector<8x128xf32> to vector<1x32xf32>
    %12 = vector.extract_strided_slice %10 {offsets = [0, 32], sizes = [1, 32], strides = [1, 1]} : vector<8x128xf32> to vector<1x32xf32>
    %13 = vector.extract_strided_slice %10 {offsets = [0, 64], sizes = [1, 32], strides = [1, 1]} : vector<8x128xf32> to vector<1x32xf32>
    %14 = vector.extract_strided_slice %10 {offsets = [0, 96], sizes = [1, 32], strides = [1, 1]} : vector<8x128xf32> to vector<1x32xf32>
    %15 = vector.extract_strided_slice %10 {offsets = [1, 0], sizes = [1, 96], strides = [1, 1]} : vector<8x128xf32> to vector<1x96xf32>
    %16 = vector.extract_strided_slice %10 {offsets = [1, 96], sizes = [1, 32], strides = [1, 1]} : vector<8x128xf32> to vector<1x32xf32>
    %17 = vector.extract_strided_slice %10 {offsets = [2, 0], sizes = [1, 128], strides = [1, 1]} : vector<8x128xf32> to vector<1x128xf32>
    %18 = vector.extract_strided_slice %10 {offsets = [3, 0], sizes = [1, 32], strides = [1, 1]} : vector<8x128xf32> to vector<1x32xf32>
    %cst = arith.constant dense<0.000000e+00> : vector<16xf32>
    %19 = vector.multi_reduction <add>, %0, %cst [1] : vector<16x32xf32> to vector<16xf32>
    %20 = vector.shape_cast %19 : vector<16xf32> to vector<16x1xf32>
    %cst_13 = arith.constant 3.200000e+01 : f32
    %21 = vector.broadcast %cst_13 : f32 to vector<16x1xf32>
    %22 = arith.divf %20, %21 : vector<16x1xf32>
    %23 = vector.broadcast %22 : vector<16x1xf32> to vector<16x32xf32>
    %24 = arith.subf %0, %23 : vector<16x32xf32>
    %25 = arith.mulf %24, %24 : vector<16x32xf32>
    %cst_14 = arith.constant dense<0.000000e+00> : vector<16xf32>
    %26 = vector.multi_reduction <add>, %25, %cst_14 [1] : vector<16x32xf32> to vector<16xf32>
    %27 = vector.shape_cast %26 : vector<16xf32> to vector<16x1xf32>
    %cst_15 = arith.constant 3.200000e+01 : f32
    %28 = vector.broadcast %cst_15 : f32 to vector<16x1xf32>
    %29 = arith.divf %27, %28 : vector<16x1xf32>
    %30 = vector.broadcast %22 : vector<16x1xf32> to vector<16x32xf32>
    %31 = arith.subf %0, %30 : vector<16x32xf32>
    %cst_16 = arith.constant 9.99999974E-6 : f32
    %32 = vector.broadcast %cst_16 : f32 to vector<16x1xf32>
    %33 = arith.addf %29, %32 : vector<16x1xf32>
    %34 = math.rsqrt %33 : vector<16x1xf32>
    %35 = vector.broadcast %34 : vector<16x1xf32> to vector<16x32xf32>
    %36 = arith.mulf %31, %35 : vector<16x32xf32>
    %37 = vector.broadcast %11 : vector<1x32xf32> to vector<16x32xf32>
    %38 = arith.mulf %36, %37 : vector<16x32xf32>
    %39 = vector.broadcast %12 : vector<1x32xf32> to vector<16x32xf32>
    %40 = arith.addf %38, %39 : vector<16x32xf32>
    %41 = arith.truncf %40 : vector<16x32xf32> to vector<16x32xbf16>
    %cst_17 = arith.constant dense<0.000000e+00> : vector<16x96xf32>
    %42 = tpu.matmul %41, %4, %cst_17 {dimension_numbers = #tpu.dot_dimension_numbers<[1], [0], [0], [1], [0, 0, 1, 1], [], []>} : vector<16x32xbf16>, vector<32x96xbf16>, vector<16x96xf32> -> vector<16x96xf32>
    %43 = vector.broadcast %15 : vector<1x96xf32> to vector<16x96xf32>
    %44 = arith.addf %42, %43 : vector<16x96xf32>
    %45 = vector.extract_strided_slice %44 {offsets = [0, 0], sizes = [16, 16], strides = [1, 1]} : vector<16x96xf32> to vector<16x16xf32>
    %46 = vector.shape_cast %45 : vector<16x16xf32> to vector<2x8x16xf32>
    %47 = vector.extract_strided_slice %44 {offsets = [0, 32], sizes = [16, 16], strides = [1, 1]} : vector<16x96xf32> to vector<16x16xf32>
    %48 = vector.shape_cast %47 : vector<16x16xf32> to vector<2x8x16xf32>
    %49 = vector.extract_strided_slice %44 {offsets = [0, 64], sizes = [16, 16], strides = [1, 1]} : vector<16x96xf32> to vector<16x16xf32>
    %50 = vector.shape_cast %49 : vector<16x16xf32> to vector<2x8x16xf32>
    "tpu.trace_start"() <{level = 10 : i32, message = "bqd,bkd->bqk"}> : () -> ()
    %cst_18 = arith.constant dense<0.000000e+00> : vector<2x8x8xf32>
    %51 = tpu.matmul %46, %48, %cst_18 {dimension_numbers = #tpu.dot_dimension_numbers<[2], [2], [1], [1], [0, 0, 0, 1, 1, 1], [0], [0]>} : vector<2x8x16xf32>, vector<2x8x16xf32>, vector<2x8x8xf32> -> vector<2x8x8xf32>
    "tpu.trace_stop"() : () -> ()
    %cst_19 = arith.constant 2.500000e-01 : f32
    %52 = vector.broadcast %cst_19 : f32 to vector<2x8x8xf32>
    %53 = arith.mulf %51, %52 : vector<2x8x8xf32>
    %54 = arith.addf %53, %1 : vector<2x8x8xf32>
    %cst_20 = arith.constant dense<0xFF800000> : vector<2x8xf32>
    %55 = vector.multi_reduction <maximumf>, %54, %cst_20 [2] : vector<2x8x8xf32> to vector<2x8xf32>
    %56 = vector.shape_cast %55 : vector<2x8xf32> to vector<2x8x1xf32>
    %57 = vector.broadcast %56 : vector<2x8x1xf32> to vector<2x8x8xf32>
    %58 = arith.subf %54, %57 : vector<2x8x8xf32>
    %59 = math.exp %58 : vector<2x8x8xf32>
    %cst_21 = arith.constant dense<0.000000e+00> : vector<2x8xf32>
    %60 = vector.multi_reduction <add>, %59, %cst_21 [2] : vector<2x8x8xf32> to vector<2x8xf32>
    %61 = vector.shape_cast %60 : vector<2x8xf32> to vector<2x8x1xf32>
    %62 = vector.broadcast %61 : vector<2x8x1xf32> to vector<2x8x8xf32>
    %63 = arith.divf %59, %62 : vector<2x8x8xf32>
    "tpu.trace_start"() <{level = 10 : i32, message = "bqk,bkd->bqd"}> : () -> ()
    %cst_22 = arith.constant dense<0.000000e+00> : vector<2x8x16xf32>
    %64 = tpu.matmul %63, %50, %cst_22 {dimension_numbers = #tpu.dot_dimension_numbers<[2], [1], [1], [2], [0, 0, 0, 1, 1, 2], [0], [0]>} : vector<2x8x8xf32>, vector<2x8x16xf32>, vector<2x8x16xf32> -> vector<2x8x16xf32>
    "tpu.trace_stop"() : () -> ()
    %65 = vector.shape_cast %64 : vector<2x8x16xf32> to vector<16x16xf32>
    %66 = vector.extract_strided_slice %44 {offsets = [0, 16], sizes = [16, 16], strides = [1, 1]} : vector<16x96xf32> to vector<16x16xf32>
    %67 = vector.shape_cast %66 : vector<16x16xf32> to vector<2x8x16xf32>
    %68 = vector.extract_strided_slice %44 {offsets = [0, 48], sizes = [16, 16], strides = [1, 1]} : vector<16x96xf32> to vector<16x16xf32>
    %69 = vector.shape_cast %68 : vector<16x16xf32> to vector<2x8x16xf32>
    %70 = vector.extract_strided_slice %44 {offsets = [0, 80], sizes = [16, 16], strides = [1, 1]} : vector<16x96xf32> to vector<16x16xf32>
    %71 = vector.shape_cast %70 : vector<16x16xf32> to vector<2x8x16xf32>
    "tpu.trace_start"() <{level = 10 : i32, message = "bqd,bkd->bqk"}> : () -> ()
    %cst_23 = arith.constant dense<0.000000e+00> : vector<2x8x8xf32>
    %72 = tpu.matmul %67, %69, %cst_23 {dimension_numbers = #tpu.dot_dimension_numbers<[2], [2], [1], [1], [0, 0, 0, 1, 1, 1], [0], [0]>} : vector<2x8x16xf32>, vector<2x8x16xf32>, vector<2x8x8xf32> -> vector<2x8x8xf32>
    "tpu.trace_stop"() : () -> ()
    %cst_24 = arith.constant 2.500000e-01 : f32
    %73 = vector.broadcast %cst_24 : f32 to vector<2x8x8xf32>
    %74 = arith.mulf %72, %73 : vector<2x8x8xf32>
    %75 = arith.addf %74, %1 : vector<2x8x8xf32>
    %cst_25 = arith.constant dense<0xFF800000> : vector<2x8xf32>
    %76 = vector.multi_reduction <maximumf>, %75, %cst_25 [2] : vector<2x8x8xf32> to vector<2x8xf32>
    %77 = vector.shape_cast %76 : vector<2x8xf32> to vector<2x8x1xf32>
    %78 = vector.broadcast %77 : vector<2x8x1xf32> to vector<2x8x8xf32>
    %79 = arith.subf %75, %78 : vector<2x8x8xf32>
    %80 = math.exp %79 : vector<2x8x8xf32>
    %cst_26 = arith.constant dense<0.000000e+00> : vector<2x8xf32>
    %81 = vector.multi_reduction <add>, %80, %cst_26 [2] : vector<2x8x8xf32> to vector<2x8xf32>
    %82 = vector.shape_cast %81 : vector<2x8xf32> to vector<2x8x1xf32>
    %83 = vector.broadcast %82 : vector<2x8x1xf32> to vector<2x8x8xf32>
    %84 = arith.divf %80, %83 : vector<2x8x8xf32>
    "tpu.trace_start"() <{level = 10 : i32, message = "bqk,bkd->bqd"}> : () -> ()
    %cst_27 = arith.constant dense<0.000000e+00> : vector<2x8x16xf32>
    %85 = tpu.matmul %84, %71, %cst_27 {dimension_numbers = #tpu.dot_dimension_numbers<[2], [1], [1], [2], [0, 0, 0, 1, 1, 2], [0], [0]>} : vector<2x8x8xf32>, vector<2x8x16xf32>, vector<2x8x16xf32> -> vector<2x8x16xf32>
    "tpu.trace_stop"() : () -> ()
    %86 = vector.shape_cast %85 : vector<2x8x16xf32> to vector<16x16xf32>
    %87 = tpu.concatenate %65, %86 in 1 : vector<16x16xf32>, vector<16x16xf32> -> vector<16x32xf32>
    %88 = arith.truncf %87 : vector<16x32xf32> to vector<16x32xbf16>
    %cst_28 = arith.constant dense<0.000000e+00> : vector<16x32xf32>
    %89 = tpu.matmul %88, %5, %cst_28 {dimension_numbers = #tpu.dot_dimension_numbers<[1], [0], [0], [1], [0, 0, 1, 1], [], []>} : vector<16x32xbf16>, vector<32x32xbf16>, vector<16x32xf32> -> vector<16x32xf32>
    %90 = vector.broadcast %16 : vector<1x32xf32> to vector<16x32xf32>
    %91 = arith.addf %89, %90 : vector<16x32xf32>
    %92 = arith.addf %0, %91 : vector<16x32xf32>
    %cst_29 = arith.constant dense<0.000000e+00> : vector<16xf32>
    %93 = vector.multi_reduction <add>, %92, %cst_29 [1] : vector<16x32xf32> to vector<16xf32>
    %94 = vector.shape_cast %93 : vector<16xf32> to vector<16x1xf32>
    %cst_30 = arith.constant 3.200000e+01 : f32
    %95 = vector.broadcast %cst_30 : f32 to vector<16x1xf32>
    %96 = arith.divf %94, %95 : vector<16x1xf32>
    %97 = vector.broadcast %96 : vector<16x1xf32> to vector<16x32xf32>
    %98 = arith.subf %92, %97 : vector<16x32xf32>
    %99 = arith.mulf %98, %98 : vector<16x32xf32>
    %cst_31 = arith.constant dense<0.000000e+00> : vector<16xf32>
    %100 = vector.multi_reduction <add>, %99, %cst_31 [1] : vector<16x32xf32> to vector<16xf32>
    %101 = vector.shape_cast %100 : vector<16xf32> to vector<16x1xf32>
    %cst_32 = arith.constant 3.200000e+01 : f32
    %102 = vector.broadcast %cst_32 : f32 to vector<16x1xf32>
    %103 = arith.divf %101, %102 : vector<16x1xf32>
    %104 = vector.broadcast %96 : vector<16x1xf32> to vector<16x32xf32>
    %105 = arith.subf %92, %104 : vector<16x32xf32>
    %cst_33 = arith.constant 9.99999974E-6 : f32
    %106 = vector.broadcast %cst_33 : f32 to vector<16x1xf32>
    %107 = arith.addf %103, %106 : vector<16x1xf32>
    %108 = math.rsqrt %107 : vector<16x1xf32>
    %109 = vector.broadcast %108 : vector<16x1xf32> to vector<16x32xf32>
    %110 = arith.mulf %105, %109 : vector<16x32xf32>
    %111 = vector.broadcast %13 : vector<1x32xf32> to vector<16x32xf32>
    %112 = arith.mulf %110, %111 : vector<16x32xf32>
    %113 = vector.broadcast %14 : vector<1x32xf32> to vector<16x32xf32>
    %114 = arith.addf %112, %113 : vector<16x32xf32>
    %115 = arith.truncf %114 : vector<16x32xf32> to vector<16x32xbf16>
    %cst_34 = arith.constant dense<0.000000e+00> : vector<16x128xf32>
    %116 = tpu.matmul %115, %6, %cst_34 {dimension_numbers = #tpu.dot_dimension_numbers<[1], [0], [0], [1], [0, 0, 1, 1], [], []>} : vector<16x32xbf16>, vector<32x128xbf16>, vector<16x128xf32> -> vector<16x128xf32>
    %117 = vector.broadcast %17 : vector<1x128xf32> to vector<16x128xf32>
    %118 = arith.addf %116, %117 : vector<16x128xf32>
    %cst_35 = arith.constant 5.000000e-01 : f32
    %119 = vector.broadcast %cst_35 : f32 to vector<16x128xf32>
    %120 = arith.mulf %119, %118 : vector<16x128xf32>
    %cst_36 = arith.constant 4.471500e-02 : f32
    %121 = vector.broadcast %cst_36 : f32 to vector<16x128xf32>
    %122 = arith.mulf %121, %118 : vector<16x128xf32>
    %123 = arith.mulf %122, %118 : vector<16x128xf32>
    %124 = arith.mulf %123, %118 : vector<16x128xf32>
    %125 = arith.addf %118, %124 : vector<16x128xf32>
    %cst_37 = arith.constant 0.797884583 : f32
    %126 = vector.broadcast %cst_37 : f32 to vector<16x128xf32>
    %127 = arith.mulf %126, %125 : vector<16x128xf32>
    %128 = math.tanh %127 : vector<16x128xf32>
    %cst_38 = arith.constant 1.000000e+00 : f32
    %129 = vector.broadcast %cst_38 : f32 to vector<16x128xf32>
    %130 = arith.addf %129, %128 : vector<16x128xf32>
    %131 = arith.mulf %120, %130 : vector<16x128xf32>
    %132 = arith.truncf %131 : vector<16x128xf32> to vector<16x128xbf16>
    %cst_39 = arith.constant dense<0.000000e+00> : vector<16x32xf32>
    %133 = tpu.matmul %132, %8, %cst_39 {dimension_numbers = #tpu.dot_dimension_numbers<[1], [0], [0], [1], [0, 0, 1, 1], [], []>} : vector<16x128xbf16>, vector<128x32xbf16>, vector<16x32xf32> -> vector<16x32xf32>
    %134 = arith.addf %92, %133 : vector<16x32xf32>
    %135 = vector.broadcast %18 : vector<1x32xf32> to vector<16x32xf32>
    %136 = arith.addf %134, %135 : vector<16x32xf32>
    %c1 = arith.constant 1 : index
    %c0_40 = arith.constant 0 : index
    %c0_41 = arith.constant 0 : index
    %137 = vector.load %arg2[%c1, %c0_40, %c0_41] : memref<2x32x256xbf16, #tpu.memory_space<vmem>>, vector<1x32x256xbf16>
    %138 = vector.shape_cast %137 : vector<1x32x256xbf16> to vector<32x256xbf16>
    %139 = vector.extract_strided_slice %138 {offsets = [0, 0], sizes = [32, 96], strides = [1, 1]} : vector<32x256xbf16> to vector<32x96xbf16>
    %140 = vector.extract_strided_slice %138 {offsets = [0, 96], sizes = [32, 32], strides = [1, 1]} : vector<32x256xbf16> to vector<32x32xbf16>
    %141 = vector.extract_strided_slice %138 {offsets = [0, 128], sizes = [32, 128], strides = [1, 1]} : vector<32x256xbf16> to vector<32x128xbf16>
    %c1_42 = arith.constant 1 : index
    %c0_43 = arith.constant 0 : index
    %c0_44 = arith.constant 0 : index
    %142 = vector.load %arg3[%c1_42, %c0_43, %c0_44] : memref<2x128x32xbf16, #tpu.memory_space<vmem>>, vector<1x128x32xbf16>
    %143 = vector.shape_cast %142 : vector<1x128x32xbf16> to vector<128x32xbf16>
    %c1_45 = arith.constant 1 : index
    %c0_46 = arith.constant 0 : index
    %c0_47 = arith.constant 0 : index
    %144 = vector.load %arg4[%c1_45, %c0_46, %c0_47] : memref<2x8x128xf32, #tpu.memory_space<vmem>>, vector<1x8x128xf32>
    %145 = vector.shape_cast %144 : vector<1x8x128xf32> to vector<8x128xf32>
    %146 = vector.extract_strided_slice %145 {offsets = [0, 0], sizes = [1, 32], strides = [1, 1]} : vector<8x128xf32> to vector<1x32xf32>
    %147 = vector.extract_strided_slice %145 {offsets = [0, 32], sizes = [1, 32], strides = [1, 1]} : vector<8x128xf32> to vector<1x32xf32>
    %148 = vector.extract_strided_slice %145 {offsets = [0, 64], sizes = [1, 32], strides = [1, 1]} : vector<8x128xf32> to vector<1x32xf32>
    %149 = vector.extract_strided_slice %145 {offsets = [0, 96], sizes = [1, 32], strides = [1, 1]} : vector<8x128xf32> to vector<1x32xf32>
    %150 = vector.extract_strided_slice %145 {offsets = [1, 0], sizes = [1, 96], strides = [1, 1]} : vector<8x128xf32> to vector<1x96xf32>
    %151 = vector.extract_strided_slice %145 {offsets = [1, 96], sizes = [1, 32], strides = [1, 1]} : vector<8x128xf32> to vector<1x32xf32>
    %152 = vector.extract_strided_slice %145 {offsets = [2, 0], sizes = [1, 128], strides = [1, 1]} : vector<8x128xf32> to vector<1x128xf32>
    %153 = vector.extract_strided_slice %145 {offsets = [3, 0], sizes = [1, 32], strides = [1, 1]} : vector<8x128xf32> to vector<1x32xf32>
    %cst_48 = arith.constant dense<0.000000e+00> : vector<16xf32>
    %154 = vector.multi_reduction <add>, %136, %cst_48 [1] : vector<16x32xf32> to vector<16xf32>
    %155 = vector.shape_cast %154 : vector<16xf32> to vector<16x1xf32>
    %cst_49 = arith.constant 3.200000e+01 : f32
    %156 = vector.broadcast %cst_49 : f32 to vector<16x1xf32>
    %157 = arith.divf %155, %156 : vector<16x1xf32>
    %158 = vector.broadcast %157 : vector<16x1xf32> to vector<16x32xf32>
    %159 = arith.subf %136, %158 : vector<16x32xf32>
    %160 = arith.mulf %159, %159 : vector<16x32xf32>
    %cst_50 = arith.constant dense<0.000000e+00> : vector<16xf32>
    %161 = vector.multi_reduction <add>, %160, %cst_50 [1] : vector<16x32xf32> to vector<16xf32>
    %162 = vector.shape_cast %161 : vector<16xf32> to vector<16x1xf32>
    %cst_51 = arith.constant 3.200000e+01 : f32
    %163 = vector.broadcast %cst_51 : f32 to vector<16x1xf32>
    %164 = arith.divf %162, %163 : vector<16x1xf32>
    %165 = vector.broadcast %157 : vector<16x1xf32> to vector<16x32xf32>
    %166 = arith.subf %136, %165 : vector<16x32xf32>
    %cst_52 = arith.constant 9.99999974E-6 : f32
    %167 = vector.broadcast %cst_52 : f32 to vector<16x1xf32>
    %168 = arith.addf %164, %167 : vector<16x1xf32>
    %169 = math.rsqrt %168 : vector<16x1xf32>
    %170 = vector.broadcast %169 : vector<16x1xf32> to vector<16x32xf32>
    %171 = arith.mulf %166, %170 : vector<16x32xf32>
    %172 = vector.broadcast %146 : vector<1x32xf32> to vector<16x32xf32>
    %173 = arith.mulf %171, %172 : vector<16x32xf32>
    %174 = vector.broadcast %147 : vector<1x32xf32> to vector<16x32xf32>
    %175 = arith.addf %173, %174 : vector<16x32xf32>
    %176 = arith.truncf %175 : vector<16x32xf32> to vector<16x32xbf16>
    %cst_53 = arith.constant dense<0.000000e+00> : vector<16x96xf32>
    %177 = tpu.matmul %176, %139, %cst_53 {dimension_numbers = #tpu.dot_dimension_numbers<[1], [0], [0], [1], [0, 0, 1, 1], [], []>} : vector<16x32xbf16>, vector<32x96xbf16>, vector<16x96xf32> -> vector<16x96xf32>
    %178 = vector.broadcast %150 : vector<1x96xf32> to vector<16x96xf32>
    %179 = arith.addf %177, %178 : vector<16x96xf32>
    %180 = vector.extract_strided_slice %179 {offsets = [0, 0], sizes = [16, 16], strides = [1, 1]} : vector<16x96xf32> to vector<16x16xf32>
    %181 = vector.shape_cast %180 : vector<16x16xf32> to vector<2x8x16xf32>
    %182 = vector.extract_strided_slice %179 {offsets = [0, 32], sizes = [16, 16], strides = [1, 1]} : vector<16x96xf32> to vector<16x16xf32>
    %183 = vector.shape_cast %182 : vector<16x16xf32> to vector<2x8x16xf32>
    %184 = vector.extract_strided_slice %179 {offsets = [0, 64], sizes = [16, 16], strides = [1, 1]} : vector<16x96xf32> to vector<16x16xf32>
    %185 = vector.shape_cast %184 : vector<16x16xf32> to vector<2x8x16xf32>
    "tpu.trace_start"() <{level = 10 : i32, message = "bqd,bkd->bqk"}> : () -> ()
    %cst_54 = arith.constant dense<0.000000e+00> : vector<2x8x8xf32>
    %186 = tpu.matmul %181, %183, %cst_54 {dimension_numbers = #tpu.dot_dimension_numbers<[2], [2], [1], [1], [0, 0, 0, 1, 1, 1], [0], [0]>} : vector<2x8x16xf32>, vector<2x8x16xf32>, vector<2x8x8xf32> -> vector<2x8x8xf32>
    "tpu.trace_stop"() : () -> ()
    %cst_55 = arith.constant 2.500000e-01 : f32
    %187 = vector.broadcast %cst_55 : f32 to vector<2x8x8xf32>
    %188 = arith.mulf %186, %187 : vector<2x8x8xf32>
    %189 = arith.addf %188, %1 : vector<2x8x8xf32>
    %cst_56 = arith.constant dense<0xFF800000> : vector<2x8xf32>
    %190 = vector.multi_reduction <maximumf>, %189, %cst_56 [2] : vector<2x8x8xf32> to vector<2x8xf32>
    %191 = vector.shape_cast %190 : vector<2x8xf32> to vector<2x8x1xf32>
    %192 = vector.broadcast %191 : vector<2x8x1xf32> to vector<2x8x8xf32>
    %193 = arith.subf %189, %192 : vector<2x8x8xf32>
    %194 = math.exp %193 : vector<2x8x8xf32>
    %cst_57 = arith.constant dense<0.000000e+00> : vector<2x8xf32>
    %195 = vector.multi_reduction <add>, %194, %cst_57 [2] : vector<2x8x8xf32> to vector<2x8xf32>
    %196 = vector.shape_cast %195 : vector<2x8xf32> to vector<2x8x1xf32>
    %197 = vector.broadcast %196 : vector<2x8x1xf32> to vector<2x8x8xf32>
    %198 = arith.divf %194, %197 : vector<2x8x8xf32>
    "tpu.trace_start"() <{level = 10 : i32, message = "bqk,bkd->bqd"}> : () -> ()
    %cst_58 = arith.constant dense<0.000000e+00> : vector<2x8x16xf32>
    %199 = tpu.matmul %198, %185, %cst_58 {dimension_numbers = #tpu.dot_dimension_numbers<[2], [1], [1], [2], [0, 0, 0, 1, 1, 2], [0], [0]>} : vector<2x8x8xf32>, vector<2x8x16xf32>, vector<2x8x16xf32> -> vector<2x8x16xf32>
    "tpu.trace_stop"() : () -> ()
    %200 = vector.shape_cast %199 : vector<2x8x16xf32> to vector<16x16xf32>
    %201 = vector.extract_strided_slice %179 {offsets = [0, 16], sizes = [16, 16], strides = [1, 1]} : vector<16x96xf32> to vector<16x16xf32>
    %202 = vector.shape_cast %201 : vector<16x16xf32> to vector<2x8x16xf32>
    %203 = vector.extract_strided_slice %179 {offsets = [0, 48], sizes = [16, 16], strides = [1, 1]} : vector<16x96xf32> to vector<16x16xf32>
    %204 = vector.shape_cast %203 : vector<16x16xf32> to vector<2x8x16xf32>
    %205 = vector.extract_strided_slice %179 {offsets = [0, 80], sizes = [16, 16], strides = [1, 1]} : vector<16x96xf32> to vector<16x16xf32>
    %206 = vector.shape_cast %205 : vector<16x16xf32> to vector<2x8x16xf32>
    "tpu.trace_start"() <{level = 10 : i32, message = "bqd,bkd->bqk"}> : () -> ()
    %cst_59 = arith.constant dense<0.000000e+00> : vector<2x8x8xf32>
    %207 = tpu.matmul %202, %204, %cst_59 {dimension_numbers = #tpu.dot_dimension_numbers<[2], [2], [1], [1], [0, 0, 0, 1, 1, 1], [0], [0]>} : vector<2x8x16xf32>, vector<2x8x16xf32>, vector<2x8x8xf32> -> vector<2x8x8xf32>
    "tpu.trace_stop"() : () -> ()
    %cst_60 = arith.constant 2.500000e-01 : f32
    %208 = vector.broadcast %cst_60 : f32 to vector<2x8x8xf32>
    %209 = arith.mulf %207, %208 : vector<2x8x8xf32>
    %210 = arith.addf %209, %1 : vector<2x8x8xf32>
    %cst_61 = arith.constant dense<0xFF800000> : vector<2x8xf32>
    %211 = vector.multi_reduction <maximumf>, %210, %cst_61 [2] : vector<2x8x8xf32> to vector<2x8xf32>
    %212 = vector.shape_cast %211 : vector<2x8xf32> to vector<2x8x1xf32>
    %213 = vector.broadcast %212 : vector<2x8x1xf32> to vector<2x8x8xf32>
    %214 = arith.subf %210, %213 : vector<2x8x8xf32>
    %215 = math.exp %214 : vector<2x8x8xf32>
    %cst_62 = arith.constant dense<0.000000e+00> : vector<2x8xf32>
    %216 = vector.multi_reduction <add>, %215, %cst_62 [2] : vector<2x8x8xf32> to vector<2x8xf32>
    %217 = vector.shape_cast %216 : vector<2x8xf32> to vector<2x8x1xf32>
    %218 = vector.broadcast %217 : vector<2x8x1xf32> to vector<2x8x8xf32>
    %219 = arith.divf %215, %218 : vector<2x8x8xf32>
    "tpu.trace_start"() <{level = 10 : i32, message = "bqk,bkd->bqd"}> : () -> ()
    %cst_63 = arith.constant dense<0.000000e+00> : vector<2x8x16xf32>
    %220 = tpu.matmul %219, %206, %cst_63 {dimension_numbers = #tpu.dot_dimension_numbers<[2], [1], [1], [2], [0, 0, 0, 1, 1, 2], [0], [0]>} : vector<2x8x8xf32>, vector<2x8x16xf32>, vector<2x8x16xf32> -> vector<2x8x16xf32>
    "tpu.trace_stop"() : () -> ()
    %221 = vector.shape_cast %220 : vector<2x8x16xf32> to vector<16x16xf32>
    %222 = tpu.concatenate %200, %221 in 1 : vector<16x16xf32>, vector<16x16xf32> -> vector<16x32xf32>
    %223 = arith.truncf %222 : vector<16x32xf32> to vector<16x32xbf16>
    %cst_64 = arith.constant dense<0.000000e+00> : vector<16x32xf32>
    %224 = tpu.matmul %223, %140, %cst_64 {dimension_numbers = #tpu.dot_dimension_numbers<[1], [0], [0], [1], [0, 0, 1, 1], [], []>} : vector<16x32xbf16>, vector<32x32xbf16>, vector<16x32xf32> -> vector<16x32xf32>
    %225 = vector.broadcast %151 : vector<1x32xf32> to vector<16x32xf32>
    %226 = arith.addf %224, %225 : vector<16x32xf32>
    %227 = arith.addf %136, %226 : vector<16x32xf32>
    %cst_65 = arith.constant dense<0.000000e+00> : vector<16xf32>
    %228 = vector.multi_reduction <add>, %227, %cst_65 [1] : vector<16x32xf32> to vector<16xf32>
    %229 = vector.shape_cast %228 : vector<16xf32> to vector<16x1xf32>
    %cst_66 = arith.constant 3.200000e+01 : f32
    %230 = vector.broadcast %cst_66 : f32 to vector<16x1xf32>
    %231 = arith.divf %229, %230 : vector<16x1xf32>
    %232 = vector.broadcast %231 : vector<16x1xf32> to vector<16x32xf32>
    %233 = arith.subf %227, %232 : vector<16x32xf32>
    %234 = arith.mulf %233, %233 : vector<16x32xf32>
    %cst_67 = arith.constant dense<0.000000e+00> : vector<16xf32>
    %235 = vector.multi_reduction <add>, %234, %cst_67 [1] : vector<16x32xf32> to vector<16xf32>
    %236 = vector.shape_cast %235 : vector<16xf32> to vector<16x1xf32>
    %cst_68 = arith.constant 3.200000e+01 : f32
    %237 = vector.broadcast %cst_68 : f32 to vector<16x1xf32>
    %238 = arith.divf %236, %237 : vector<16x1xf32>
    %239 = vector.broadcast %231 : vector<16x1xf32> to vector<16x32xf32>
    %240 = arith.subf %227, %239 : vector<16x32xf32>
    %cst_69 = arith.constant 9.99999974E-6 : f32
    %241 = vector.broadcast %cst_69 : f32 to vector<16x1xf32>
    %242 = arith.addf %238, %241 : vector<16x1xf32>
    %243 = math.rsqrt %242 : vector<16x1xf32>
    %244 = vector.broadcast %243 : vector<16x1xf32> to vector<16x32xf32>
    %245 = arith.mulf %240, %244 : vector<16x32xf32>
    %246 = vector.broadcast %148 : vector<1x32xf32> to vector<16x32xf32>
    %247 = arith.mulf %245, %246 : vector<16x32xf32>
    %248 = vector.broadcast %149 : vector<1x32xf32> to vector<16x32xf32>
    %249 = arith.addf %247, %248 : vector<16x32xf32>
    %250 = arith.truncf %249 : vector<16x32xf32> to vector<16x32xbf16>
    %cst_70 = arith.constant dense<0.000000e+00> : vector<16x128xf32>
    %251 = tpu.matmul %250, %141, %cst_70 {dimension_numbers = #tpu.dot_dimension_numbers<[1], [0], [0], [1], [0, 0, 1, 1], [], []>} : vector<16x32xbf16>, vector<32x128xbf16>, vector<16x128xf32> -> vector<16x128xf32>
    %252 = vector.broadcast %152 : vector<1x128xf32> to vector<16x128xf32>
    %253 = arith.addf %251, %252 : vector<16x128xf32>
    %cst_71 = arith.constant 5.000000e-01 : f32
    %254 = vector.broadcast %cst_71 : f32 to vector<16x128xf32>
    %255 = arith.mulf %254, %253 : vector<16x128xf32>
    %cst_72 = arith.constant 4.471500e-02 : f32
    %256 = vector.broadcast %cst_72 : f32 to vector<16x128xf32>
    %257 = arith.mulf %256, %253 : vector<16x128xf32>
    %258 = arith.mulf %257, %253 : vector<16x128xf32>
    %259 = arith.mulf %258, %253 : vector<16x128xf32>
    %260 = arith.addf %253, %259 : vector<16x128xf32>
    %cst_73 = arith.constant 0.797884583 : f32
    %261 = vector.broadcast %cst_73 : f32 to vector<16x128xf32>
    %262 = arith.mulf %261, %260 : vector<16x128xf32>
    %263 = math.tanh %262 : vector<16x128xf32>
    %cst_74 = arith.constant 1.000000e+00 : f32
    %264 = vector.broadcast %cst_74 : f32 to vector<16x128xf32>
    %265 = arith.addf %264, %263 : vector<16x128xf32>
    %266 = arith.mulf %255, %265 : vector<16x128xf32>
    %267 = arith.truncf %266 : vector<16x128xf32> to vector<16x128xbf16>
    %cst_75 = arith.constant dense<0.000000e+00> : vector<16x32xf32>
    %268 = tpu.matmul %267, %143, %cst_75 {dimension_numbers = #tpu.dot_dimension_numbers<[1], [0], [0], [1], [0, 0, 1, 1], [], []>} : vector<16x128xbf16>, vector<128x32xbf16>, vector<16x32xf32> -> vector<16x32xf32>
    %269 = arith.addf %227, %268 : vector<16x32xf32>
    %270 = vector.broadcast %153 : vector<1x32xf32> to vector<16x32xf32>
    %271 = arith.addf %269, %270 : vector<16x32xf32>
    %c0_76 = arith.constant 0 : index
    %c0_77 = arith.constant 0 : index
    %c0_78 = arith.constant 0 : index
    %272 = vector.load %arg4[%c0_76, %c0_77, %c0_78] : memref<2x8x128xf32, #tpu.memory_space<vmem>>, vector<1x8x128xf32>
    %273 = vector.shape_cast %272 : vector<1x8x128xf32> to vector<8x128xf32>
    %274 = vector.extract_strided_slice %273 {offsets = [4, 0], sizes = [1, 32], strides = [1, 1]} : vector<8x128xf32> to vector<1x32xf32>
    %275 = vector.extract_strided_slice %273 {offsets = [4, 32], sizes = [1, 32], strides = [1, 1]} : vector<8x128xf32> to vector<1x32xf32>
    %cst_79 = arith.constant dense<0.000000e+00> : vector<16xf32>
    %276 = vector.multi_reduction <add>, %271, %cst_79 [1] : vector<16x32xf32> to vector<16xf32>
    %277 = vector.shape_cast %276 : vector<16xf32> to vector<16x1xf32>
    %cst_80 = arith.constant 3.200000e+01 : f32
    %278 = vector.broadcast %cst_80 : f32 to vector<16x1xf32>
    %279 = arith.divf %277, %278 : vector<16x1xf32>
    %280 = vector.broadcast %279 : vector<16x1xf32> to vector<16x32xf32>
    %281 = arith.subf %271, %280 : vector<16x32xf32>
    %282 = arith.mulf %281, %281 : vector<16x32xf32>
    %cst_81 = arith.constant dense<0.000000e+00> : vector<16xf32>
    %283 = vector.multi_reduction <add>, %282, %cst_81 [1] : vector<16x32xf32> to vector<16xf32>
    %284 = vector.shape_cast %283 : vector<16xf32> to vector<16x1xf32>
    %cst_82 = arith.constant 3.200000e+01 : f32
    %285 = vector.broadcast %cst_82 : f32 to vector<16x1xf32>
    %286 = arith.divf %284, %285 : vector<16x1xf32>
    %287 = vector.broadcast %279 : vector<16x1xf32> to vector<16x32xf32>
    %288 = arith.subf %271, %287 : vector<16x32xf32>
    %cst_83 = arith.constant 9.99999974E-6 : f32
    %289 = vector.broadcast %cst_83 : f32 to vector<16x1xf32>
    %290 = arith.addf %286, %289 : vector<16x1xf32>
    %291 = math.rsqrt %290 : vector<16x1xf32>
    %292 = vector.broadcast %291 : vector<16x1xf32> to vector<16x32xf32>
    %293 = arith.mulf %288, %292 : vector<16x32xf32>
    %294 = vector.broadcast %274 : vector<1x32xf32> to vector<16x32xf32>
    %295 = arith.mulf %293, %294 : vector<16x32xf32>
    %296 = vector.broadcast %275 : vector<1x32xf32> to vector<16x32xf32>
    %297 = arith.addf %295, %296 : vector<16x32xf32>
    %298 = arith.truncf %297 : vector<16x32xf32> to vector<16x32xbf16>
    %c0_84 = arith.constant 0 : index
    %c0_85 = arith.constant 0 : index
    %299 = vector.load %arg5[%c0_84, %c0_85] : memref<32x128xbf16, #tpu.memory_space<vmem>>, vector<32x128xbf16>
    %cst_86 = arith.constant dense<0.000000e+00> : vector<16x128xf32>
    %300 = tpu.matmul %298, %299, %cst_86 {dimension_numbers = #tpu.dot_dimension_numbers<[1], [0], [0], [1], [0, 0, 1, 1], [], []>} : vector<16x32xbf16>, vector<32x128xbf16>, vector<16x128xf32> -> vector<16x128xf32>
    %c0_87 = arith.constant 0 : index
    %c0_88 = arith.constant 0 : index
    %301 = vector.load %arg6[%c0_87, %c0_88] : memref<16x128xf32, #tpu.memory_space<vmem>>, vector<16x128xf32>
    tpu.vector_store %arg6[%c0_87, %c0_88], %300 {strides = array<i32>} : memref<16x128xf32, #tpu.memory_space<vmem>>, vector<16x128xf32>,
    return
  }
}

</mosaic_0001>

<bundles_post_ra>
// kernel: forward.1
= control target key start
LH: loop header
LB: loop body
LE: loop exit
PB: predicated region body
PF: predicated region fallthrough
CT: control target
= control target key end

     0   :  { %vm50_vm0 = vcmask 261120   ;;  %s3270_s0 = inlined_call_operand.vmem [shape: f32[16,32], index: 0, kind: input, shape index: {}]   ;;  %s3271_s1 = inlined_call_operand.vmem [shape: f32[2,8,8], index: 1, kind: input, shape index: {}]   ;;  %s3272_s2 = inlined_call_operand.vmem [shape: bf16[2,32,256], index: 2, kind: input, shape index: {}]   ;;  %s3273_s3 = inlined_call_operand.vmem [shape: bf16[2,128,32], index: 3, kind: input, shape index: {}]   ;;  %s3274_s4 = inlined_call_operand.vmem [shape: f32[2,8,128], index: 4, kind: input, shape index: {}]   ;;  %s3275_s5 = inlined_call_operand.vmem [shape: bf16[32,128], index: 5, kind: input, shape index: {}]   ;;  %s3276_s6 = inlined_call_operand.hbm [shape: f32[16,128], index: 6, kind: output, shape index: {}]  }
   0x1   :  { %v2789_v0 = vld [vmem:[%s3270_s0] sm:$0xff]  ;;  %v2794_v1 = vld [vmem:[%s3270_s0 + $0x8] sm:$0xff] }
   0x2   :  { %v51_v2 = vsel %vm50_vm0, %v2789_v0, 0.0  ;;  %v54_v3 = vsel %vm50_vm0, %v2794_v1, 0.0 }
   0x3   :  { %52 = vadd.xlane.f32.xlu0 %v51_v2 }
   0x7   :  { %55 = vadd.xlane.f32.xlu0 %v54_v3 }
   0x8   :  { %11 = vsyncpa [#allocation3], 0  ;;  %v78_v4 = vlaneseq  ;;  %v2805_v6 = vld [vmem:[%s3274_s4] sm:$0xff]  ;;  %s2739_s0 = smov 96   ;;  %v2740_v20 = vmov 0.0   ;;  %vm2741_vm1 = vmmov 0  }
   0x9   :  { %v2822_v19 = vld [vmem:[%s3272_s2] ss:$8 sps:$4 sm:$0xff]   ;;  %2427 = vmatprep.subr.bf16.mxu0 %v2740_v20  ;;  %2435 = vmatprep.subr.mxu1 %v2740_v20  ;;  %v2831_v21 = vld [vmem:[%s3272_s2 + $0x10] ss:$8 sps:$4 sm:$0xff]   ;;  %vm154_vm2 = vcmask 130048   ;;  %vm310_vm3 = vcmask 64512  }
   0xa   :  { %v2800_v5 = vshrl.u32 %v78_v4, 7  ;;  %2428 = vmatpush3.bf16.msra.mxu0 %v2822_v19  ;;  %2431 = vmatprep.mubr.msk.bf16.mxu0 %vm2741_vm1, %v2740_v20  ;;  %v2875_v49 = vld [vmem:[%s3271_s1] sm:$0xff]  ;;  %v2881_v54 = vld [vmem:[%s3271_s1 + $0x8] sm:$0xff]  ;;  %s2742_s11 = smov 64   ;;  %s2743_s12 = smov 80  }
   0xb   :  { %2429 = vmatprep.subr.bf16.mxu0 %v2740_v20  ;;  %2437 = vmatprep.mubr.msk.f32.mxu1 %vm2741_vm1, %v2740_v20  ;;  %s2744_s1 = smov 112   ;;  %s2745_s13 = smov 48  }
   0xc   :  { %v80_v7 = vsub.s32 0, %v2800_v5  ;;  %v93_v38 = vsub.s32 1, %v2800_v5  ;;  %s2746_s14 = smov 32   ;;  %s2747_s15 = smov 16  }
   0xe   :  { %v2811_v8 = vrot.slane %v2805_v6, %v80_v7  ;;  %2430 = vmatpush3.bf16.msra.mxu0 %v2831_v21  ;;  %v2848_v39 = vrot.slane %v2805_v6, %v93_v38 }
   0xf   :  { %2450 = vmatprep.subr.mxu0 %v2740_v20 }
  0x1d   :  { %85 = vrot.lane.b32.xlu0 %v2811_v8, %s2739_s0 }
  0x90   :  { %v53_v9 = vpop.xlane.xlu0 %52 }
  0x91   :  { %v58_v10 = vmul.f32 0.03125, %v53_v9 }
  0x93   :  { %v60_v11 = vsub.f32 %v2789_v0, %v58_v10 }
  0x94   :  { %v56_v12 = vpop.xlane.xlu0 %55 }
  0x95   :  { %v59_v13 = vmul.f32 0.03125, %v56_v12  ;;  %v62_v14 = vmul.f32 %v60_v11, %v60_v11 }
  0x97   :  { %v61_v15 = vsub.f32 %v2794_v1, %v59_v13  ;;  %v64_v16 = vsel %vm50_vm0, %v62_v14, 0.0 }
  0x98   :  { %65 = vadd.xlane.f32.xlu1 %v64_v16  ;;  %v86_v33 = vpop.permute.xlu0 %85 }
  0x99   :  { %v63_v17 = vmul.f32 %v61_v15, %v61_v15 }
  0x9b   :  { %v67_v18 = vsel %vm50_vm0, %v63_v17, 0.0 }
  0x9c   :  { %68 = vadd.xlane.f32.xlu1 %v67_v18 }
 0x125   :  { %v66_v22 = vpop.xlane.xlu1 %65 }
 0x126   :  { %v70_v23 = vmul.f32 0.03125, %v66_v22 }
 0x128   :  { %v72_v24 = vadd.f32 1e-05, %v70_v23 }
 0x129   :  { %v69_v25 = vpop.xlane.xlu1 %68 }
 0x12a   :  { %2655 = vrsqrt.f32 %v72_v24  ;;  %v71_v26 = vmul.f32 0.03125, %v69_v25 }
 0x12c   :  { %v73_v27 = vadd.f32 1e-05, %v71_v26 }
 0x12e   :  { %2657 = vrsqrt.f32 %v73_v27 }
 0x134   :  { %v2656_v28 = vpop.eup %2655 }
 0x135   :  { %v76_v29 = vmul.f32 %v2656_v28, %v60_v11 }
 0x137   :  { %v82_v32 = vmul.f32 %v2811_v8, %v76_v29 }
 0x138   :  { %v2658_v30 = vpop.eup %2657 }
 0x139   :  { %v77_v31 = vmul.f32 %v2658_v30, %v61_v15  ;;  %v88_v35 = vadd.f32 %v86_v33, %v82_v32 }
 0x13b   :  { %v83_v34 = vmul.f32 %v2811_v8, %v77_v31 }
 0x13d   :  { %v89_v36 = vadd.f32 %v86_v33, %v83_v34 }
 0x13f   :  { %v90_v37 = vpack.c.bf16 %v89_v36, %v88_v35 }
 0x141   :  { %2432 = vmatmul.mubr.msk.bf16.vlgmr.msra.gmra.mrb[0].mxu0 %vm50_vm0, %v90_v37 }
 0x142   :  { %2452 = vmatprep.mubr.msk.f32.mxu0 %vm2741_vm1, %v2740_v20 }
 0x214   :  { %v144_v40 = vpop.f32.mrb[0].mxu0 }
 0x215   :  { %v2851_v41 = vadd.f32 %v144_v40, %v2848_v39  ;;  %v2433_v42 = vpop.f32.mrb[1].mxu0 }
 0x216   :  { %v147_v43 = vpop.f32.mrb[2].mxu0 }
 0x217   :  { %152 = vrot.lane.b32.xlu1 %v2851_v41, %s2739_s0  ;;  %v2434_v44 = vpop.f32.mrb[3].mxu0  ;;  %v2856_v45 = vadd.f32 %v147_v43, %v2848_v39 }
 0x21b   :  { %230 = vrot.lane.b32.xlu1 %v2856_v45, %s2739_s0 }
 0x289   :  { %v153_v46 = vpop.permute.xlu1 %152 }
 0x28a   :  { %2436 = vmatpush3.xpose.msk.msra.mxu1 %vm154_vm2, %v153_v46 }
 0x28b   :  { %2440 = vmatprep.subr.mxu1 %v2740_v20 }
 0x28d   :  { %2438 = vmatmul.mubr.msk.f32.vlgmr.msra.gmra.mrb[0].mxu1 %vm154_vm2, %v2851_v41  ;;  %v231_v47 = vpop.permute.xlu1 %230 }
 0x28e   :  { %2441 = vmatpush3.xpose.msk.msra.mxu1 %vm154_vm2, %v231_v47  ;;  %2442 = vmatprep.mubr.msk.f32.mxu1 %vm2741_vm1, %v2740_v20 }
 0x28f   :  { %2445 = vmatprep.subr.mxu1 %v2740_v20 }
 0x291   :  { %2443 = vmatmul.mubr.msk.f32.vlgmr.msra.gmra.mrb[2].mxu1 %vm154_vm2, %v2856_v45 }
 0x292   :  { %2447 = vmatprep.mubr.msk.f32.mxu1 %vm2741_vm1, %v2740_v20 }
 0x360   :  { %v225_v48 = vpop.f32.mrb[0].mxu1 }
 0x361   :  { %v306_v50 = vmul.f32 0.25, %v225_v48  ;;  %v2439_v51 = vpop.f32.mrb[1].mxu1 }
 0x363   :  { %v308_v52 = vadd.f32 %v306_v50, %v2875_v49 }
 0x364   :  { %v302_v53 = vpop.f32.mrb[2].mxu1 }
 0x365   :  { %v307_v55 = vmul.f32 0.25, %v302_v53  ;;  %v2444_v56 = vpop.f32.mrb[3].mxu1  ;;  %v311_v57 = vsel %vm310_vm3, %v308_v52, -inf }
 0x366   :  { %312 = vmax.xlane.f32.xlu1 %v311_v57 }
 0x367   :  { %v309_v58 = vadd.f32 %v307_v55, %v2881_v54 }
 0x369   :  { %v314_v59 = vsel %vm310_vm3, %v309_v58, -inf }
 0x36a   :  { %315 = vmax.xlane.f32.xlu0 %v314_v59 }
 0x377   :  { %333 = vrot.lane.b32.xlu1 %v2851_v41, %s2742_s11 }
 0x37b   :  { %487 = vrot.lane.b32.xlu1 %v2851_v41, %s2743_s12 }
 0x37f   :  { %565 = vrot.lane.b32.xlu1 %v2856_v45, %s2743_s12 }
 0x380   :  { %409 = vrot.lane.b32.xlu0 %v2856_v45, %s2742_s11 }
 0x383   :  { %485 = vrot.lane.b32.xlu1 %v2851_v41, %s2744_s1 }
 0x3f3   :  { %v313_v60 = vpop.xlane.xlu1 %312 }
 0x3f4   :  { %v317_v61 = vsub.f32 %v308_v52, %v313_v60 }
 0x3f6   :  { %v319_v62 = vmul.f32 1.442695, %v317_v61 }
 0x3f7   :  { %v316_v63 = vpop.xlane.xlu0 %315  ;;  %v334_v2 = vpop.permute.xlu1 %333 }
 0x3f8   :  { %2659 = vpow2.f32 %v319_v62  ;;  %v318_v3 = vsub.f32 %v309_v58, %v316_v63  ;;  %2446 = vmatpush3.msra.mxu1 %v334_v2 }
 0x3f9   :  { %2455 = vmatprep.subr.mxu1 %v2740_v20 }
 0x3fa   :  { %v321_v4 = vmul.f32 1.442695, %v318_v3 }
 0x3fb   :  { %v410_v9 = vpop.permute.xlu0 %409  ;;  %v488_v16 = vpop.permute.xlu1 %487 }
 0x3fc   :  { %2661 = vpow2.f32 %v321_v4  ;;  %2451 = vmatpush3.msra.mxu0 %v410_v9 }
 0x3fd   :  { %2460 = vmatprep.subr.mxu0 %v2740_v20 }
 0x3ff   :  { %v566_v18 = vpop.permute.xlu1 %565 }
 0x402   :  { %v2660_v10 = vpop.eup %2659 }
 0x403   :  { %v323_v11 = vsel %vm310_vm3, %v2660_v10, 0.0  ;;  %v486_v25 = vpop.permute.xlu1 %485 }
 0x404   :  { %324 = vadd.xlane.f32.xlu0 %v323_v11 }
 0x406   :  { %v2662_v12 = vpop.eup %2661 }
 0x407   :  { %v326_v13 = vsel %vm310_vm3, %v2662_v12, 0.0 }
 0x408   :  { %327 = vadd.xlane.f32.xlu0 %v326_v13 }
 0x41e   :  { %563 = vrot.lane.b32.xlu0 %v2856_v45, %s2744_s1 }
 0x491   :  { %v325_v14 = vpop.xlane.xlu0 %324 }
 0x492   :  { %2663 = vrcp.f32 %v325_v14 }
 0x495   :  { %v328_v15 = vpop.xlane.xlu0 %327 }
 0x496   :  { %2665 = vrcp.f32 %v328_v15 }
 0x499   :  { %v564_v26 = vpop.permute.xlu0 %563 }
 0x49c   :  { %v2664_v17 = vpop.eup %2663 }
 0x49d   :  { %v330_v22 = vmul.f32 %v2664_v17, %v2660_v10 }
 0x49f   :  { %2448 = vmatmul.mubr.msk.f32.vlgmr.msra.gmra.mrb[4].mxu1 %vm310_vm3, %v330_v22 }
 0x4a0   :  { %v2666_v23 = vpop.eup %2665  ;;  %2456 = vmatpush3.xpose.msk.msra.mxu1 %vm154_vm2, %v488_v16  ;;  %2457 = vmatprep.mubr.msk.f32.mxu1 %vm2741_vm1, %v2740_v20  ;;  %v2627_v16 = vld [vmem:[%s3272_s2 + $0x4] ss:$8 sps:$4 sm:$0xff]  }
 0x4a1   :  { %v332_v24 = vmul.f32 %v2666_v23, %v2662_v12  ;;  %2465 = vmatprep.subr.mxu1 %v2740_v20 }
 0x4a3   :  { %2453 = vmatmul.mubr.msk.f32.vlgmr.msra.gmra.mrb[4].mxu0 %vm310_vm3, %v332_v24  ;;  %2458 = vmatmul.mubr.msk.f32.vlgmr.msra.gmra.mrb[6].mxu1 %vm154_vm2, %v486_v25 }
 0x4a4   :  { %2461 = vmatpush3.xpose.msk.msra.mxu0 %vm154_vm2, %v566_v18  ;;  %2462 = vmatprep.mubr.msk.f32.mxu0 %vm2741_vm1, %v2740_v20 }
 0x4a5   :  { %2470 = vmatprep.subr.mxu0 %v2740_v20  ;;  %2467 = vmatprep.mubr.msk.f32.mxu1 %vm2741_vm1, %v2740_v20 }
 0x4a7   :  { %2463 = vmatmul.mubr.msk.f32.vlgmr.msra.gmra.mrb[6].mxu0 %vm154_vm2, %v564_v26 }
 0x4a8   :  { %2472 = vmatprep.mubr.msk.f32.mxu0 %vm2741_vm1, %v2740_v20 }
 0x572   :  { %v2918_v27 = vpop.f32.mrb[4].mxu1 }
 0x573   :  { %v2449_v28 = vpop.f32.mrb[5].mxu1 }
 0x576   :  { %v2920_v29 = vpop.f32.mrb[4].mxu0  ;;  %v559_v30 = vpop.f32.mrb[6].mxu1 }
 0x577   :  { %v641_v31 = vmul.f32 0.25, %v559_v30  ;;  %v2454_v32 = vpop.f32.mrb[5].mxu0  ;;  %v2459_v33 = vpop.f32.mrb[7].mxu1 }
 0x579   :  { %v643_v34 = vadd.f32 %v641_v31, %v2875_v49 }
 0x57a   :  { %v637_v35 = vpop.f32.mrb[6].mxu0 }
 0x57b   :  { %v642_v36 = vmul.f32 0.25, %v637_v35  ;;  %v2464_v37 = vpop.f32.mrb[7].mxu0  ;;  %v645_v40 = vsel %vm310_vm3, %v643_v34, -inf }
 0x57c   :  { %646 = vmax.xlane.f32.xlu1 %v645_v40 }
 0x57d   :  { %v644_v42 = vadd.f32 %v642_v36, %v2881_v54 }
 0x57f   :  { %v648_v43 = vsel %vm310_vm3, %v644_v42, -inf }
 0x580   :  { %649 = vmax.xlane.f32.xlu0 %v648_v43 }
 0x58d   :  { %667 = vrot.lane.b32.xlu1 %v2851_v41, %s2745_s13 }
 0x591   :  { %830 = vrot.lane.b32.xlu1 %v2822_v19, %s2746_s14 }
 0x609   :  { %v647_v44 = vpop.xlane.xlu1 %646 }
 0x60a   :  { %v651_v46 = vsub.f32 %v643_v34, %v647_v44 }
 0x60c   :  { %v653_v47 = vmul.f32 1.442695, %v651_v46 }
 0x60d   :  { %v668_v48 = vpop.permute.xlu1 %667  ;;  %v650_v50 = vpop.xlane.xlu0 %649 }
 0x60e   :  { %2667 = vpow2.f32 %v653_v47  ;;  %v652_v51 = vsub.f32 %v644_v42, %v650_v50  ;;  %2466 = vmatpush3.msra.mxu1 %v668_v48 }
 0x60f   :  { %2491 = vmatprep.subr.bf16.mxu1 %v2740_v20 }
 0x610   :  { %v655_v52 = vmul.f32 1.442695, %v652_v51 }
 0x612   :  { %2669 = vpow2.f32 %v655_v52 }
 0x618   :  { %v2668_v53 = vpop.eup %2667 }
 0x619   :  { %v657_v55 = vsel %vm310_vm3, %v2668_v53, 0.0 }
 0x61a   :  { %658 = vadd.xlane.f32.xlu0 %v657_v55 }
 0x61c   :  { %v2670_v56 = vpop.eup %2669 }
 0x61d   :  { %v660_v57 = vsel %vm310_vm3, %v2670_v56, 0.0 }
 0x61e   :  { %661 = vadd.xlane.f32.xlu0 %v660_v57 }
 0x634   :  { %743 = vrot.lane.b32.xlu0 %v2856_v45, %s2745_s13  ;;  %v831_v45 = vpop.permute.xlu1 %830 }
 0x638   :  { %837 = vrot.lane.b32.xlu0 %v2848_v39, %s2746_s14 }
 0x6a7   :  { %v659_v41 = vpop.xlane.xlu0 %658 }
 0x6a8   :  { %2671 = vrcp.f32 %v659_v41 }
 0x6ab   :  { %v662_v58 = vpop.xlane.xlu0 %661 }
 0x6ac   :  { %2673 = vrcp.f32 %v662_v58 }
 0x6af   :  { %v744_v59 = vpop.permute.xlu0 %743 }
 0x6b0   :  { %2471 = vmatpush3.msra.mxu0 %v744_v59 }
 0x6b1   :  { %2475 = vmatprep.subr.bf16.mxu0 %v2740_v20 }
 0x6b2   :  { %v2672_v60 = vpop.eup %2671 }
 0x6b3   :  { %v664_v61 = vmul.f32 %v2672_v60, %v2668_v53  ;;  %v838_v17 = vpop.permute.xlu0 %837 }
 0x6b5   :  { %2468 = vmatmul.mubr.msk.f32.vlgmr.msra.gmra.mrb[8].mxu1 %vm310_vm3, %v664_v61  ;;  %v2632_v61 = vld [vmem:[%s3273_s3 + $0x8] sm:$0xff]  }
 0x6b6   :  { %v2674_v62 = vpop.eup %2673  ;;  %2507 = vmatprep.mubr.msk.bf16.mxu1 %vm2741_vm1, %v2740_v20 }
 0x6b7   :  { %v666_v63 = vmul.f32 %v2674_v62, %v2670_v56  ;;  %v2633_v62 = vld [vmem:[%s3273_s3 + $0x10] sm:$0xff]  }
 0x6b9   :  { %2473 = vmatmul.mubr.msk.f32.vlgmr.msra.gmra.mrb[8].mxu0 %vm310_vm3, %v666_v63  ;;  %v2634_v63 = vld [vmem:[%s3273_s3 + $0x18] sm:$0xff]  }
 0x6ba   :  { %2479 = vmatprep.mubr.msk.bf16.mxu0 %vm2741_vm1, %v2740_v20  ;;  %2476 = vmatpush3.bf16.msra.mxu0 %v831_v45  ;;  %v2635_v45 = vld [vmem:[%s3273_s3 + $0x20] sm:$0xff]  }
 0x6bb   :  { %2477 = vmatprep.subr.bf16.mxu0 %v2740_v20 }
 0x788   :  { %v739_v2 = vpop.f32.mrb[8].mxu1 }
 0x789   :  { %v2469_v3 = vpop.f32.mrb[9].mxu1 }
 0x78a   :  { %v2637_v3 = vld [vmem:[%s3273_s3 + $0x30] sm:$0xff]  }
 0x78c   :  { %v815_v4 = vpop.f32.mrb[8].mxu0 }
 0x78d   :  { %v2615_v9 = vpack.i.bf16 %v815_v4, %v739_v2  ;;  %v2474_v10 = vpop.f32.mrb[9].mxu0  ;;  %v2636_v2 = vld [vmem:[%s3273_s3 + $0x28] sm:$0xff]   ;;  %v2638_v4 = vld [vmem:[%s3273_s3 + $0x38] sm:$0xff]  }
 0x78f   :  { %2616 = vrot.lane.b32.xlu1 %v2615_v9, %s2747_s15  ;;  %v925_v9 = vsub.s32 2, %v2800_v5 }
 0x791   :  { %v926_v10 = vrot.slane %v2805_v6, %v925_v9 }
 0x793   :  { %832 = vrot.lane.b32.xlu1 %v2831_v21, %s2746_s14  ;;  %v2630_v21 = vld [vmem:[%s3272_s2 + $0x14] ss:$8 sps:$4 sm:$0xff]  }
 0x801   :  { %v2617_v11 = vpop.permute.xlu1 %2616 }
 0x802   :  { %v2619_v19 = vunpack.i.h.bf16 %v2617_v11  ;;  %v2618_v12 = vunpack.i.l.bf16 %v2617_v11 }
 0x804   :  { %v828_v39 = vsel %vm154_vm2, %v2920_v29, %v2619_v19  ;;  %v827_v13 = vsel %vm154_vm2, %v2918_v27, %v2618_v12 }
 0x805   :  { %v829_v14 = vpack.c.bf16 %v828_v39, %v827_v13  ;;  %v833_v15 = vpop.permute.xlu1 %832 }
 0x806   :  { %2478 = vmatpush3.bf16.msra.mxu0 %v833_v15 }
 0x807   :  { %2483 = vmatprep.subr.bf16.mxu0 %v2740_v20 }
 0x809   :  { %2480 = vmatmul.mubr.msk.bf16.vlgmr.msra.gmra.mrb[12].mxu0 %vm50_vm0, %v829_v14 }
 0x80a   :  { %2484 = vmatpush3.bf16.msra.mxu0 %v2627_v16  ;;  %2487 = vmatprep.mubr.msk.bf16.mxu0 %vm2741_vm1, %v2740_v20 }
 0x80b   :  { %2485 = vmatprep.subr.bf16.mxu0 %v2740_v20 }
 0x80e   :  { %2486 = vmatpush3.bf16.msra.mxu0 %v2630_v21 }
 0x80f   :  { %2511 = vmatprep.subr.bf16.mxu0 %v2740_v20 }
 0x8dc   :  { %v877_v18 = vpop.f32.mrb[12].mxu0 }
 0x8dd   :  { %v878_v22 = vadd.f32 %v877_v18, %v838_v17  ;;  %v2481_v23 = vpop.f32.mrb[13].mxu0 }
 0x8de   :  { %v880_v24 = vpop.f32.mrb[14].mxu0 }
 0x8df   :  { %v2965_v25 = vadd.f32 %v878_v22, %v2789_v0  ;;  %v881_v26 = vadd.f32 %v880_v24, %v838_v17  ;;  %v2482_v27 = vpop.f32.mrb[15].mxu0 }
 0x8e1   :  { %v2968_v28 = vadd.f32 %v881_v26, %v2794_v1  ;;  %v886_v29 = vsel %vm50_vm0, %v2965_v25, 0.0 }
 0x8e2   :  { %887 = vadd.xlane.f32.xlu1 %v886_v29 }
 0x8e3   :  { %v889_v30 = vsel %vm50_vm0, %v2968_v28, 0.0 }
 0x8e4   :  { %890 = vadd.xlane.f32.xlu0 %v889_v30 }
 0x8f3   :  { %912 = vrot.lane.b32.xlu1 %v2811_v8, %s2742_s11 }
 0x96f   :  { %v888_v31 = vpop.xlane.xlu1 %887 }
 0x970   :  { %v892_v32 = vmul.f32 0.03125, %v888_v31 }
 0x971   :  { %v891_v0 = vpop.xlane.xlu0 %890 }
 0x972   :  { %v894_v33 = vsub.f32 %v2965_v25, %v892_v32  ;;  %v893_v34 = vmul.f32 0.03125, %v891_v0 }
 0x973   :  { %v913_v52 = vpop.permute.xlu1 %912 }
 0x974   :  { %v895_v1 = vsub.f32 %v2968_v28, %v893_v34  ;;  %v896_v35 = vmul.f32 %v894_v33, %v894_v33 }
 0x976   :  { %v898_v36 = vsel %vm50_vm0, %v896_v35, 0.0  ;;  %v897_v37 = vmul.f32 %v895_v1, %v895_v1 }
 0x977   :  { %899 = vadd.xlane.f32.xlu0 %v898_v36  ;;  %v1091_v36 = vsub.s32 3, %v2800_v5 }
 0x978   :  { %v901_v40 = vsel %vm50_vm0, %v897_v37, 0.0 }
 0x979   :  { %v1092_v37 = vrot.slane %v2805_v6, %v1091_v36 }
 0x97b   :  { %902 = vadd.xlane.f32.xlu0 %v901_v40 }
 0x991   :  { %917 = vrot.lane.b32.xlu0 %v2811_v8, %s2746_s14  ;;  %v2631_v8 = vld [vmem:[%s3273_s3] sm:$0xff]  }
 0x992   :  { %2492 = vmatpush3.bf16.msra.mxu1 %v2631_v8 }
 0x993   :  { %2493 = vmatprep.subr.bf16.mxu1 %v2740_v20 }
 0x996   :  { %2494 = vmatpush3.bf16.msra.mxu1 %v2632_v61  ;;  %v3056_v61 = vld [vmem:[%s3272_s2 + $0x20] ss:$8 sps:$4 sm:$0xff]  }
 0x997   :  { %2495 = vmatprep.subr.bf16.mxu1 %v2740_v20 }
 0x99a   :  { %2496 = vmatpush3.bf16.msra.mxu1 %v2633_v62  ;;  %v3063_v62 = vld [vmem:[%s3272_s2 + $0x30] ss:$8 sps:$4 sm:$0xff]  }
 0x99b   :  { %2497 = vmatprep.subr.bf16.mxu1 %v2740_v20 }
 0x99e   :  { %2498 = vmatpush3.bf16.msra.mxu1 %v2634_v63 }
 0x99f   :  { %2499 = vmatprep.subr.bf16.mxu1 %v2740_v20 }
 0x9a2   :  { %2500 = vmatpush3.bf16.msra.mxu1 %v2635_v45 }
 0x9a3   :  { %2501 = vmatprep.subr.bf16.mxu1 %v2740_v20 }
 0x9a6   :  { %2502 = vmatpush3.bf16.msra.mxu1 %v2636_v2 }
 0x9a7   :  { %2503 = vmatprep.subr.bf16.mxu1 %v2740_v20 }
 0x9aa   :  { %2504 = vmatpush3.bf16.msra.mxu1 %v2637_v3 }
 0x9ab   :  { %2505 = vmatprep.subr.bf16.mxu1 %v2740_v20 }
 0x9ae   :  { %2506 = vmatpush3.bf16.msra.mxu1 %v2638_v4 }
 0x9af   :  { %2549 = vmatprep.subr.mxu1 %v2740_v20 }
 0xa04   :  { %v900_v42 = vpop.xlane.xlu0 %899 }
 0xa05   :  { %v904_v43 = vmul.f32 0.03125, %v900_v42 }
 0xa07   :  { %v906_v44 = vadd.f32 1e-05, %v904_v43 }
 0xa08   :  { %v903_v46 = vpop.xlane.xlu0 %902 }
 0xa09   :  { %2675 = vrsqrt.f32 %v906_v44  ;;  %v905_v47 = vmul.f32 0.03125, %v903_v46 }
 0xa0b   :  { %v907_v48 = vadd.f32 1e-05, %v905_v47 }
 0xa0c   :  { %v918_v57 = vpop.permute.xlu0 %917 }
 0xa0d   :  { %2677 = vrsqrt.f32 %v907_v48 }
 0xa13   :  { %v2676_v50 = vpop.eup %2675 }
 0xa14   :  { %v910_v51 = vmul.f32 %v2676_v50, %v894_v33 }
 0xa16   :  { %v915_v56 = vmul.f32 %v913_v52, %v910_v51 }
 0xa17   :  { %v2678_v53 = vpop.eup %2677 }
 0xa18   :  { %v911_v55 = vmul.f32 %v2678_v53, %v895_v1  ;;  %v920_v58 = vadd.f32 %v918_v57, %v915_v56 }
 0xa1a   :  { %v916_v41 = vmul.f32 %v913_v52, %v911_v55 }
 0xa1c   :  { %v921_v59 = vadd.f32 %v918_v57, %v916_v41 }
 0xa1e   :  { %v922_v60 = vpack.c.bf16 %v921_v59, %v920_v58 }
 0xa20   :  { %2488 = vmatmul.mubr.msk.bf16.vlgmr.msra.gmra.mrb[16].mxu0 %vm50_vm0, %v922_v60  ;;  %v3044_v60 = vld [vmem:[%s3274_s4 + $0x8] sm:$0xff] }
 0xa21   :  { %2515 = vmatprep.mubr.msk.bf16.mxu0 %vm2741_vm1, %v2740_v20  ;;  %v3049_v8 = vrot.slane %v3044_v60, %v80_v7  ;;  %2512 = vmatpush3.bf16.msra.mxu0 %v3056_v61 }
 0xa22   :  { %2513 = vmatprep.subr.bf16.mxu0 %v2740_v20 }
 0xa25   :  { %2514 = vmatpush3.bf16.msra.mxu0 %v3063_v62 }
 0xa26   :  { %2519 = vmatprep.subr.mxu0 %v2740_v20 }
 0xaf3   :  { %v972_v11 = vpop.f32.mrb[16].mxu0 }
 0xaf4   :  { %v973_v19 = vadd.f32 %v972_v11, %v926_v10  ;;  %v2489_v12 = vpop.f32.mrb[17].mxu0 }
 0xaf5   :  { %v975_v39 = vpop.f32.mrb[18].mxu0 }
 0xaf6   :  { %v981_v13 = vmul.f32 0.044715, %v973_v19  ;;  %v976_v14 = vadd.f32 %v975_v39, %v926_v10  ;;  %v2490_v15 = vpop.f32.mrb[19].mxu0  ;;  %v979_v32 = vmul.f32 0.5, %v973_v19 }
 0xaf8   :  { %v983_v16 = vmul.f32 %v981_v13, %v973_v19  ;;  %v982_v21 = vmul.f32 0.044715, %v976_v14  ;;  %v980_v0 = vmul.f32 0.5, %v976_v14 }
 0xafa   :  { %v985_v17 = vmul.f32 %v983_v16, %v973_v19  ;;  %v984_v18 = vmul.f32 %v982_v21, %v976_v14 }
 0xafc   :  { %v987_v22 = vadd.f32 %v985_v17, %v973_v19  ;;  %v986_v23 = vmul.f32 %v984_v18, %v976_v14  ;;  %v3075_v17 = vrot.slane %v3044_v60, %v93_v38 }
 0xafe   :  { %v989_v24 = vmul.f32 0.7978846, %v987_v22  ;;  %v988_v26 = vadd.f32 %v986_v23, %v976_v14 }
 0xb00   :  { %2679 = vtanh.f32 %v989_v24  ;;  %v990_v27 = vmul.f32 0.7978846, %v988_v26 }
 0xb02   :  { %2681 = vtanh.f32 %v990_v27 }
 0xb0a   :  { %v2680_v29 = vpop.eup %2679 }
 0xb0b   :  { %v993_v30 = vadd.f32 1.0, %v2680_v29 }
 0xb0c   :  { %v2682_v31 = vpop.eup %2681 }
 0xb0d   :  { %v994_v33 = vadd.f32 1.0, %v2682_v31  ;;  %v995_v34 = vmul.f32 %v993_v30, %v979_v32 }
 0xb0f   :  { %v996_v1 = vmul.f32 %v994_v33, %v980_v0 }
 0xb11   :  { %v997_v35 = vpack.c.bf16 %v996_v1, %v995_v34 }
 0xb13   :  { %2508 = vmatmul.mubr.bf16.vlgmr.msra.gmra.mrb[12].mxu1 %v997_v35 }
 0xb14   :  { %2551 = vmatprep.mubr.msk.f32.mxu1 %vm2741_vm1, %v2740_v20 }
 0xbe6   :  { %v1080_v40 = vpop.f32.mrb[12].mxu1 }
 0xbe7   :  { %v1087_v42 = vadd.f32 %v1080_v40, %v2965_v25  ;;  %v2509_v43 = vpop.f32.mrb[13].mxu1 }
 0xbe8   :  { %v1083_v44 = vpop.f32.mrb[14].mxu1 }
 0xbe9   :  { %v3028_v46 = vadd.f32 %v1092_v37, %v1087_v42  ;;  %v1088_v47 = vadd.f32 %v1083_v44, %v2968_v28  ;;  %v2510_v48 = vpop.f32.mrb[15].mxu1 }
 0xbeb   :  { %v3031_v50 = vadd.f32 %v1092_v37, %v1088_v47  ;;  %v1119_v51 = vsel %vm50_vm0, %v3028_v46, 0.0 }
 0xbec   :  { %1120 = vadd.xlane.f32.xlu1 %v1119_v51 }
 0xbed   :  { %v1122_v52 = vsel %vm50_vm0, %v3031_v50, 0.0 }
 0xbee   :  { %1123 = vadd.xlane.f32.xlu0 %v1122_v52 }
 0xc79   :  { %v1121_v6 = vpop.xlane.xlu1 %1120 }
 0xc7a   :  { %v1125_v53 = vmul.f32 0.03125, %v1121_v6 }
 0xc7b   :  { %v1124_v25 = vpop.xlane.xlu0 %1123 }
 0xc7c   :  { %v1127_v55 = vsub.f32 %v3028_v46, %v1125_v53  ;;  %v1126_v56 = vmul.f32 0.03125, %v1124_v25 }
 0xc7e   :  { %v1128_v57 = vsub.f32 %v3031_v50, %v1126_v56  ;;  %v1129_v28 = vmul.f32 %v1127_v55, %v1127_v55 }
 0xc80   :  { %v1131_v41 = vsel %vm50_vm0, %v1129_v28, 0.0  ;;  %v1130_v58 = vmul.f32 %v1128_v57, %v1128_v57 }
 0xc81   :  { %1132 = vadd.xlane.f32.xlu1 %v1131_v41 }
 0xc82   :  { %v1134_v59 = vsel %vm50_vm0, %v1130_v58, 0.0 }
 0xc83   :  { %1135 = vadd.xlane.f32.xlu0 %v1134_v59 }
 0xc92   :  { %1152 = vrot.lane.b32.xlu1 %v3049_v8, %s2739_s0 }
 0xd0e   :  { %v1133_v7 = vpop.xlane.xlu1 %1132 }
 0xd0f   :  { %v1137_v63 = vmul.f32 0.03125, %v1133_v7 }
 0xd10   :  { %v1136_v45 = vpop.xlane.xlu0 %1135 }
 0xd11   :  { %v1139_v2 = vadd.f32 1e-05, %v1137_v63  ;;  %v1138_v3 = vmul.f32 0.03125, %v1136_v45 }
 0xd12   :  { %v1153_v13 = vpop.permute.xlu1 %1152 }
 0xd13   :  { %2683 = vrsqrt.f32 %v1139_v2  ;;  %v1140_v4 = vadd.f32 1e-05, %v1138_v3 }
 0xd15   :  { %2685 = vrsqrt.f32 %v1140_v4 }
 0xd1d   :  { %v2684_v10 = vpop.eup %2683 }
 0xd1e   :  { %v1143_v11 = vmul.f32 %v2684_v10, %v1127_v55 }
 0xd1f   :  { %v2686_v19 = vpop.eup %2685 }
 0xd20   :  { %v1149_v12 = vmul.f32 %v3049_v8, %v1143_v11  ;;  %v1144_v39 = vmul.f32 %v2686_v19, %v1128_v57 }
 0xd22   :  { %v1150_v14 = vmul.f32 %v3049_v8, %v1144_v39  ;;  %v1155_v15 = vadd.f32 %v1153_v13, %v1149_v12 }
 0xd24   :  { %v1156_v16 = vadd.f32 %v1153_v13, %v1150_v14 }
 0xd26   :  { %v1157_v21 = vpack.c.bf16 %v1156_v16, %v1155_v15 }
 0xd28   :  { %2516 = vmatmul.mubr.msk.bf16.vlgmr.msra.gmra.mrb[20].mxu0 %vm50_vm0, %v1157_v21 }
 0xd29   :  { %2521 = vmatprep.mubr.msk.f32.mxu0 %vm2741_vm1, %v2740_v20 }
 0xdfb   :  { %v1211_v18 = vpop.f32.mrb[20].mxu0 }
 0xdfc   :  { %v3078_v22 = vadd.f32 %v1211_v18, %v3075_v17  ;;  %v2517_v23 = vpop.f32.mrb[21].mxu0 }
 0xdfd   :  { %v1214_v24 = vpop.f32.mrb[22].mxu0 }
 0xdfe   :  { %v3081_v26 = vadd.f32 %v1214_v24, %v3075_v17  ;;  %1219 = vrot.lane.b32.xlu0 %v3078_v22, %s2739_s0  ;;  %v2518_v27 = vpop.f32.mrb[23].mxu0 }
 0xe00   :  { %1296 = vrot.lane.b32.xlu1 %v3081_v26, %s2739_s0 }
 0xe70   :  { %v1220_v29 = vpop.permute.xlu0 %1219 }
 0xe71   :  { %2520 = vmatpush3.xpose.msk.msra.mxu0 %vm154_vm2, %v1220_v29 }
 0xe72   :  { %2524 = vmatprep.subr.mxu0 %v2740_v20  ;;  %v1297_v38 = vpop.permute.xlu1 %1296 }
 0xe74   :  { %2522 = vmatmul.mubr.msk.f32.vlgmr.msra.gmra.mrb[10].mxu0 %vm154_vm2, %v3078_v22 }
 0xe75   :  { %2525 = vmatpush3.xpose.msk.msra.mxu0 %vm154_vm2, %v1297_v38  ;;  %2526 = vmatprep.mubr.msk.f32.mxu0 %vm2741_vm1, %v2740_v20 }
 0xe76   :  { %2529 = vmatprep.subr.mxu0 %v2740_v20 }
 0xe78   :  { %2527 = vmatmul.mubr.msk.f32.vlgmr.msra.gmra.mrb[24].mxu0 %vm154_vm2, %v3081_v26 }
 0xe79   :  { %2531 = vmatprep.mubr.msk.f32.mxu0 %vm2741_vm1, %v2740_v20 }
 0xf47   :  { %v1291_v30 = vpop.f32.mrb[10].mxu0 }
 0xf48   :  { %v1372_v31 = vmul.f32 0.25, %v1291_v30  ;;  %v2523_v32 = vpop.f32.mrb[11].mxu0 }
 0xf4a   :  { %v1374_v0 = vadd.f32 %v1372_v31, %v2875_v49 }
 0xf4b   :  { %v1368_v33 = vpop.f32.mrb[24].mxu0 }
 0xf4c   :  { %v1373_v34 = vmul.f32 0.25, %v1368_v33  ;;  %v2528_v1 = vpop.f32.mrb[25].mxu0  ;;  %v1376_v35 = vsel %vm310_vm3, %v1374_v0, -inf }
 0xf4d   :  { %1377 = vmax.xlane.f32.xlu1 %v1376_v35 }
 0xf4e   :  { %v1375_v37 = vadd.f32 %v1373_v34, %v2881_v54 }
 0xf50   :  { %v1379_v40 = vsel %vm310_vm3, %v1375_v37, -inf }
 0xf51   :  { %1380 = vmax.xlane.f32.xlu0 %v1379_v40 }
 0xf5e   :  { %1474 = vrot.lane.b32.xlu1 %v3081_v26, %s2742_s11 }
 0xf62   :  { %1552 = vrot.lane.b32.xlu1 %v3078_v22, %s2743_s12 }
 0xf66   :  { %1550 = vrot.lane.b32.xlu1 %v3078_v22, %s2744_s1 }
 0xfda   :  { %v1378_v42 = vpop.xlane.xlu1 %1377 }
 0xfdb   :  { %v1382_v43 = vsub.f32 %v1374_v0, %v1378_v42 }
 0xfdd   :  { %v1384_v44 = vmul.f32 1.442695, %v1382_v43 }
 0xfde   :  { %v1381_v47 = vpop.xlane.xlu0 %1380  ;;  %v1475_v55 = vpop.permute.xlu1 %1474 }
 0xfdf   :  { %2687 = vpow2.f32 %v1384_v44  ;;  %v1383_v48 = vsub.f32 %v1375_v37, %v1381_v47 }
 0xfe1   :  { %v1386_v51 = vmul.f32 1.442695, %v1383_v48 }
 0xfe2   :  { %v1553_v56 = vpop.permute.xlu1 %1552 }
 0xfe3   :  { %2689 = vpow2.f32 %v1386_v51 }
 0xfe6   :  { %v1551_v57 = vpop.permute.xlu1 %1550 }
 0xfe9   :  { %v2688_v52 = vpop.eup %2687 }
 0xfea   :  { %v1388_v6 = vsel %vm310_vm3, %v2688_v52, 0.0 }
 0xfeb   :  { %1389 = vadd.xlane.f32.xlu0 %v1388_v6 }
 0xfed   :  { %v2690_v53 = vpop.eup %2689 }
 0xfee   :  { %v1391_v25 = vsel %vm310_vm3, %v2690_v53, 0.0 }
 0xfef   :  { %1392 = vadd.xlane.f32.xlu1 %v1391_v25 }
0x1000   :  { %1628 = vrot.lane.b32.xlu1 %v3081_v26, %s2744_s1 }
0x1001   :  { %1398 = vrot.lane.b32.xlu0 %v3078_v22, %s2742_s11 }
0x1005   :  { %1630 = vrot.lane.b32.xlu0 %v3081_v26, %s2743_s12 }
0x1078   :  { %v1390_v28 = vpop.xlane.xlu0 %1389 }
0x1079   :  { %2691 = vrcp.f32 %v1390_v28 }
0x107c   :  { %v1393_v41 = vpop.xlane.xlu1 %1392  ;;  %v1399_v58 = vpop.permute.xlu0 %1398 }
0x107d   :  { %2693 = vrcp.f32 %v1393_v41  ;;  %2530 = vmatpush3.msra.mxu0 %v1399_v58 }
0x107e   :  { %2534 = vmatprep.subr.mxu0 %v2740_v20 }
0x1080   :  { %v1631_v2 = vpop.permute.xlu0 %1630  ;;  %v1629_v3 = vpop.permute.xlu1 %1628 }
0x1083   :  { %v2692_v59 = vpop.eup %2691 }
0x1084   :  { %v1395_v7 = vmul.f32 %v2692_v59, %v2688_v52 }
0x1086   :  { %2532 = vmatmul.mubr.msk.f32.vlgmr.msra.gmra.mrb[26].mxu0 %vm310_vm3, %v1395_v7 }
0x1087   :  { %v2694_v63 = vpop.eup %2693  ;;  %2535 = vmatpush3.msra.mxu0 %v1475_v55  ;;  %2536 = vmatprep.mubr.msk.f32.mxu0 %vm2741_vm1, %v2740_v20 }
0x1088   :  { %v1397_v45 = vmul.f32 %v2694_v63, %v2690_v53  ;;  %2539 = vmatprep.subr.mxu0 %v2740_v20 }
0x108a   :  { %2537 = vmatmul.mubr.msk.f32.vlgmr.msra.gmra.mrb[28].mxu0 %vm310_vm3, %v1397_v45 }
0x108b   :  { %2541 = vmatprep.mubr.msk.f32.mxu0 %vm2741_vm1, %v2740_v20 }
0x108e   :  { %2540 = vmatpush3.xpose.msk.msra.mxu0 %vm154_vm2, %v1553_v56 }
0x108f   :  { %2544 = vmatprep.subr.mxu0 %v2740_v20 }
0x1091   :  { %2542 = vmatmul.mubr.msk.f32.vlgmr.msra.gmra.mrb[30].mxu0 %vm154_vm2, %v1551_v57 }
0x1092   :  { %2545 = vmatpush3.xpose.msk.msra.mxu0 %vm154_vm2, %v1631_v2  ;;  %2546 = vmatprep.mubr.msk.f32.mxu0 %vm2741_vm1, %v2740_v20 }
0x1093   :  { %2554 = vmatprep.subr.mxu0 %v2740_v20 }
0x1095   :  { %2547 = vmatmul.mubr.msk.f32.vlgmr.msra.gmra.mrb[32].mxu0 %vm154_vm2, %v1629_v3 }
0x1096   :  { %2556 = vmatprep.mubr.msk.f32.mxu0 %vm2741_vm1, %v2740_v20 }
0x1159   :  { %v3135_v4 = vpop.f32.mrb[26].mxu0 }
0x115a   :  { %v2533_v10 = vpop.f32.mrb[27].mxu0 }
0x115d   :  { %v3137_v11 = vpop.f32.mrb[28].mxu0 }
0x115e   :  { %v2538_v19 = vpop.f32.mrb[29].mxu0 }
0x1164   :  { %v1624_v12 = vpop.f32.mrb[30].mxu0 }
0x1165   :  { %v1706_v39 = vmul.f32 0.25, %v1624_v12  ;;  %v2543_v13 = vpop.f32.mrb[31].mxu0 }
0x1167   :  { %v1708_v14 = vadd.f32 %v1706_v39, %v2875_v49 }
0x1168   :  { %v1702_v15 = vpop.f32.mrb[32].mxu0 }
0x1169   :  { %v1707_v16 = vmul.f32 0.25, %v1702_v15  ;;  %v2548_v21 = vpop.f32.mrb[33].mxu0  ;;  %v1710_v18 = vsel %vm310_vm3, %v1708_v14, -inf  ;;  %v2643_v15 = vld [vmem:[%s3272_s2 + $0x24] ss:$8 sps:$4 sm:$0xff]  }
0x116a   :  { %1711 = vmax.xlane.f32.xlu0 %v1710_v18 }
0x116b   :  { %v1709_v23 = vadd.f32 %v1707_v16, %v2881_v54  ;;  %v2644_v16 = vld [vmem:[%s3272_s2 + $0x34] ss:$8 sps:$4 sm:$0xff]  }
0x116d   :  { %v1713_v24 = vsel %vm310_vm3, %v1709_v23, -inf }
0x116e   :  { %1714 = vmax.xlane.f32.xlu1 %v1713_v24 }
0x117f   :  { %1808 = vrot.lane.b32.xlu1 %v3081_v26, %s2745_s13 }
0x1183   :  { %1895 = vrot.lane.b32.xlu1 %v3056_v61, %s2746_s14 }
0x11f7   :  { %v1712_v27 = vpop.xlane.xlu0 %1711 }
0x11f8   :  { %v1716_v29 = vsub.f32 %v1708_v14, %v1712_v27 }
0x11fa   :  { %v1718_v49 = vmul.f32 1.442695, %v1716_v29 }
0x11fb   :  { %v1715_v38 = vpop.xlane.xlu1 %1714 }
0x11fc   :  { %2695 = vpow2.f32 %v1718_v49  ;;  %v1717_v30 = vsub.f32 %v1709_v23, %v1715_v38 }
0x11fe   :  { %v1720_v31 = vmul.f32 1.442695, %v1717_v30 }
0x11ff   :  { %v1809_v32 = vpop.permute.xlu1 %1808 }
0x1200   :  { %2697 = vpow2.f32 %v1720_v31  ;;  %2555 = vmatpush3.msra.mxu0 %v1809_v32 }
0x1201   :  { %2567 = vmatprep.subr.bf16.mxu0 %v2740_v20 }
0x1206   :  { %v2696_v54 = vpop.eup %2695 }
0x1207   :  { %v1722_v0 = vsel %vm310_vm3, %v2696_v54, 0.0 }
0x1208   :  { %1723 = vadd.xlane.f32.xlu0 %v1722_v0 }
0x120a   :  { %v2698_v26 = vpop.eup %2697 }
0x120b   :  { %v1725_v33 = vsel %vm310_vm3, %v2698_v26, 0.0 }
0x120c   :  { %1726 = vadd.xlane.f32.xlu0 %v1725_v33 }
0x1222   :  { %1732 = vrot.lane.b32.xlu0 %v3078_v22, %s2745_s13 }
0x1226   :  { %1897 = vrot.lane.b32.xlu0 %v3063_v62, %s2746_s14  ;;  %v1896_v62 = vpop.permute.xlu1 %1895 }
0x1295   :  { %v1724_v61 = vpop.xlane.xlu0 %1723 }
0x1296   :  { %2699 = vrcp.f32 %v1724_v61 }
0x1299   :  { %v1727_v34 = vpop.xlane.xlu0 %1726 }
0x129a   :  { %2701 = vrcp.f32 %v1727_v34  ;;  %v2645_v34 = vld [vmem:[%s3273_s3 + $0x40] sm:$0xff]  }
0x129d   :  { %v1733_v1 = vpop.permute.xlu0 %1732 }
0x129e   :  { %2550 = vmatpush3.msra.mxu1 %v1733_v1  ;;  %v2646_v1 = vld [vmem:[%s3273_s3 + $0x48] sm:$0xff]  }
0x129f   :  { %2559 = vmatprep.subr.bf16.mxu1 %v2740_v20 }
0x12a0   :  { %v2700_v35 = vpop.eup %2699 }
0x12a1   :  { %v1729_v37 = vmul.f32 %v2700_v35, %v2696_v54  ;;  %v1898_v42 = vpop.permute.xlu0 %1897  ;;  %v2647_v35 = vld [vmem:[%s3273_s3 + $0x50] sm:$0xff]  }
0x12a3   :  { %2552 = vmatmul.mubr.msk.f32.vlgmr.msra.gmra.mrb[10].mxu1 %vm310_vm3, %v1729_v37  ;;  %v2648_v37 = vld [vmem:[%s3273_s3 + $0x58] sm:$0xff]  }
0x12a4   :  { %v2702_v40 = vpop.eup %2701  ;;  %2563 = vmatprep.mubr.msk.bf16.mxu1 %vm2741_vm1, %v2740_v20  ;;  %2560 = vmatpush3.bf16.msra.mxu1 %v1896_v62  ;;  %v2651_v62 = vld [vmem:[%s3273_s3 + $0x70] sm:$0xff]  }
0x12a5   :  { %v1731_v22 = vmul.f32 %v2702_v40, %v2698_v26  ;;  %2561 = vmatprep.subr.bf16.mxu1 %v2740_v20  ;;  %v2649_v40 = vld [vmem:[%s3273_s3 + $0x60] sm:$0xff]  }
0x12a7   :  { %2557 = vmatmul.mubr.msk.f32.vlgmr.msra.gmra.mrb[34].mxu0 %vm310_vm3, %v1731_v22  ;;  %v2650_v22 = vld [vmem:[%s3273_s3 + $0x68] sm:$0xff]  }
0x12a8   :  { %2571 = vmatprep.mubr.msk.bf16.mxu0 %vm2741_vm1, %v2740_v20  ;;  %2562 = vmatpush3.bf16.msra.mxu1 %v1898_v42  ;;  %v2652_v42 = vld [vmem:[%s3273_s3 + $0x78] sm:$0xff]  }
0x12a9   :  { %2575 = vmatprep.subr.bf16.mxu1 %v2740_v20  ;;  %2568 = vmatpush3.bf16.msra.mxu0 %v2643_v15 }
0x12aa   :  { %2569 = vmatprep.subr.bf16.mxu0 %v2740_v20 }
0x12ad   :  { %2570 = vmatpush3.bf16.msra.mxu0 %v2644_v16 }
0x12ae   :  { %2595 = vmatprep.subr.bf16.mxu0 %v2740_v20 }
0x1376   :  { %v1804_v43 = vpop.f32.mrb[10].mxu1 }
0x1377   :  { %v2553_v44 = vpop.f32.mrb[11].mxu1 }
0x137a   :  { %v1880_v47 = vpop.f32.mrb[34].mxu0 }
0x137b   :  { %v2620_v48 = vpack.i.bf16 %v1880_v47, %v1804_v43  ;;  %v2558_v51 = vpop.f32.mrb[35].mxu0  ;;  %v1991_v43 = vrot.slane %v3044_v60, %v925_v9 }
0x137d   :  { %2621 = vrot.lane.b32.xlu1 %v2620_v48, %s2747_s15 }
0x1381   :  { %1902 = vrot.lane.b32.xlu1 %v3075_v17, %s2746_s14 }
0x13ef   :  { %v2622_v52 = vpop.permute.xlu1 %2621 }
0x13f0   :  { %v2624_v6 = vunpack.i.h.bf16 %v2622_v52  ;;  %v2623_v53 = vunpack.i.l.bf16 %v2622_v52 }
0x13f2   :  { %v1893_v25 = vsel %vm154_vm2, %v3137_v11, %v2624_v6  ;;  %v1892_v55 = vsel %vm154_vm2, %v3135_v4, %v2623_v53 }
0x13f3   :  { %v1894_v56 = vpack.c.bf16 %v1893_v25, %v1892_v55  ;;  %v1903_v57 = vpop.permute.xlu1 %1902 }
0x13f5   :  { %2564 = vmatmul.mubr.msk.bf16.vlgmr.msra.gmra.mrb[16].mxu1 %vm50_vm0, %v1894_v56 }
0x13f6   :  { %2591 = vmatprep.mubr.msk.bf16.mxu1 %vm2741_vm1, %v2740_v20  ;;  %2576 = vmatpush3.bf16.msra.mxu1 %v2645_v34 }
0x13f7   :  { %2577 = vmatprep.subr.bf16.mxu1 %v2740_v20 }
0x13fa   :  { %2578 = vmatpush3.bf16.msra.mxu1 %v2646_v1 }
0x13fb   :  { %2579 = vmatprep.subr.bf16.mxu1 %v2740_v20 }
0x13fe   :  { %2580 = vmatpush3.bf16.msra.mxu1 %v2647_v35 }
0x13ff   :  { %2581 = vmatprep.subr.bf16.mxu1 %v2740_v20 }
0x1402   :  { %2582 = vmatpush3.bf16.msra.mxu1 %v2648_v37 }
0x1403   :  { %2583 = vmatprep.subr.bf16.mxu1 %v2740_v20 }
0x1406   :  { %2584 = vmatpush3.bf16.msra.mxu1 %v2649_v40 }
0x1407   :  { %2585 = vmatprep.subr.bf16.mxu1 %v2740_v20 }
0x140a   :  { %2586 = vmatpush3.bf16.msra.mxu1 %v2650_v22 }
0x140b   :  { %2587 = vmatprep.subr.bf16.mxu1 %v2740_v20 }
0x140e   :  { %2588 = vmatpush3.bf16.msra.mxu1 %v2651_v62 }
0x140f   :  { %2589 = vmatprep.subr.bf16.mxu1 %v2740_v20 }
0x1412   :  { %2590 = vmatpush3.bf16.msra.mxu1 %v2652_v42 }
0x14c8   :  { %v1942_v28 = vpop.f32.mrb[16].mxu1 }
0x14c9   :  { %v1943_v41 = vadd.f32 %v1942_v28, %v1903_v57  ;;  %v2565_v58 = vpop.f32.mrb[17].mxu1 }
0x14ca   :  { %v1945_v17 = vpop.f32.mrb[18].mxu1 }
0x14cb   :  { %v3174_v59 = vadd.f32 %v1943_v41, %v3028_v46  ;;  %v1946_v7 = vadd.f32 %v1945_v17, %v1903_v57  ;;  %v2566_v63 = vpop.f32.mrb[19].mxu1 }
0x14cd   :  { %v3177_v45 = vadd.f32 %v1946_v7, %v3031_v50  ;;  %v1951_v2 = vsel %vm50_vm0, %v3174_v59, 0.0 }
0x14ce   :  { %1952 = vadd.xlane.f32.xlu0 %v1951_v2 }
0x14cf   :  { %v1954_v3 = vsel %vm50_vm0, %v3177_v45, 0.0 }
0x14d0   :  { %1955 = vadd.xlane.f32.xlu1 %v1954_v3 }
0x14e1   :  { %1982 = vrot.lane.b32.xlu1 %v3049_v8, %s2746_s14 }
0x155b   :  { %v1953_v4 = vpop.xlane.xlu0 %1952 }
0x155c   :  { %v1957_v10 = vmul.f32 0.03125, %v1953_v4 }
0x155d   :  { %v1956_v46 = vpop.xlane.xlu1 %1955 }
0x155e   :  { %v1959_v11 = vsub.f32 %v3174_v59, %v1957_v10  ;;  %v1958_v19 = vmul.f32 0.03125, %v1956_v46 }
0x1560   :  { %v1960_v50 = vsub.f32 %v3177_v45, %v1958_v19  ;;  %v1961_v12 = vmul.f32 %v1959_v11, %v1959_v11 }
0x1561   :  { %v1983_v54 = vpop.permute.xlu1 %1982 }
0x1562   :  { %v1963_v39 = vsel %vm50_vm0, %v1961_v12, 0.0  ;;  %v1962_v13 = vmul.f32 %v1960_v50, %v1960_v50 }
0x1563   :  { %1964 = vadd.xlane.f32.xlu0 %v1963_v39 }
0x1564   :  { %v1966_v14 = vsel %vm50_vm0, %v1962_v13, 0.0 }
0x1567   :  { %1967 = vadd.xlane.f32.xlu0 %v1966_v14 }
0x157d   :  { %1977 = vrot.lane.b32.xlu0 %v3049_v8, %s2742_s11 }
0x15f0   :  { %v1965_v21 = vpop.xlane.xlu0 %1964 }
0x15f1   :  { %v1969_v18 = vmul.f32 0.03125, %v1965_v21 }
0x15f3   :  { %v1971_v23 = vadd.f32 1e-05, %v1969_v18 }
0x15f4   :  { %v1968_v24 = vpop.xlane.xlu0 %1967 }
0x15f5   :  { %2703 = vrsqrt.f32 %v1971_v23  ;;  %v1970_v8 = vmul.f32 0.03125, %v1968_v24 }
0x15f7   :  { %v1972_v27 = vadd.f32 1e-05, %v1970_v8 }
0x15f8   :  { %v1978_v38 = vpop.permute.xlu0 %1977 }
0x15f9   :  { %2705 = vrsqrt.f32 %v1972_v27 }
0x15ff   :  { %v2704_v29 = vpop.eup %2703 }
0x1600   :  { %v1975_v49 = vmul.f32 %v2704_v29, %v1959_v11 }
0x1602   :  { %v1980_v32 = vmul.f32 %v1978_v38, %v1975_v49 }
0x1603   :  { %v2706_v30 = vpop.eup %2705 }
0x1604   :  { %v1976_v31 = vmul.f32 %v2706_v30, %v1960_v50  ;;  %v1985_v26 = vadd.f32 %v1983_v54, %v1980_v32  ;;  %v2157_v50 = vrot.slane %v3044_v60, %v1091_v36  ;;  %v2160_v32 = vld [vmem:[%s3274_s4] sm:$0xff]  ;;  %s2748_s4 = smov [#allocation2]  }
0x1606   :  { %v1981_v0 = vmul.f32 %v1978_v38, %v1976_v31  ;;  %v2189_v31 = vsub.s32 4, %v2800_v5 }
0x1608   :  { %v1986_v33 = vadd.f32 %v1983_v54, %v1981_v0  ;;  %v2190_v54 = vrot.slane %v2160_v32, %v2189_v31  ;;  %v2653_v0 = vld [vmem:[%s3275_s5] sm:$0xff]  }
0x160a   :  { %v1987_v61 = vpack.c.bf16 %v1986_v33, %v1985_v26  ;;  %v2654_v26 = vld [vmem:[%s3275_s5 + $0x8] sm:$0xff]   ;;  %s2267_s5 = sshll.u32 %s2748_s4, 4  ;;  %s2268_s5 = int_to_ptr.vmem [resolvable:$true] %s2267_s5 }
0x160b   :  { %p2720_p1 = scmp.lt.s32.totalorder %s2268_s5, %s2268_s5 }
0x160c   :  { %2572 = vmatmul.mubr.msk.bf16.vlgmr.msra.gmra.mrb[36].mxu0 %vm50_vm0, %v1987_v61 }
0x160d   :  { %2599 = vmatprep.mubr.msk.bf16.mxu0 %vm2741_vm1, %v2740_v20  ;;  %2596 = vmatpush3.bf16.msra.mxu0 %v2653_v0 }
0x160e   :  { %2597 = vmatprep.subr.bf16.mxu0 %v2740_v20 }
0x1611   :  { %2598 = vmatpush3.bf16.msra.mxu0 %v2654_v26 }
0x16df   :  { %v2037_v44 = vpop.f32.mrb[36].mxu0 }
0x16e0   :  { %v2038_v47 = vadd.f32 %v2037_v44, %v1991_v43  ;;  %v2573_v48 = vpop.f32.mrb[37].mxu0 }
0x16e1   :  { %v2040_v51 = vpop.f32.mrb[38].mxu0 }
0x16e2   :  { %v2046_v52 = vmul.f32 0.044715, %v2038_v47  ;;  %v2041_v6 = vadd.f32 %v2040_v51, %v1991_v43  ;;  %v2574_v53 = vpop.f32.mrb[39].mxu0  ;;  %v2044_v3 = vmul.f32 0.5, %v2038_v47 }
0x16e4   :  { %v2048_v25 = vmul.f32 %v2046_v52, %v2038_v47  ;;  %v2047_v55 = vmul.f32 0.044715, %v2041_v6  ;;  %v2045_v4 = vmul.f32 0.5, %v2041_v6 }
0x16e6   :  { %v2050_v56 = vmul.f32 %v2048_v25, %v2038_v47  ;;  %v2049_v57 = vmul.f32 %v2047_v55, %v2041_v6 }
0x16e8   :  { %v2052_v28 = vadd.f32 %v2050_v56, %v2038_v47  ;;  %v2051_v41 = vmul.f32 %v2049_v57, %v2041_v6 }
0x16ea   :  { %v2054_v58 = vmul.f32 0.7978846, %v2052_v28  ;;  %v2053_v17 = vadd.f32 %v2051_v41, %v2041_v6 }
0x16ec   :  { %2707 = vtanh.f32 %v2054_v58  ;;  %v2055_v7 = vmul.f32 0.7978846, %v2053_v17 }
0x16ee   :  { %2709 = vtanh.f32 %v2055_v7 }
0x16f6   :  { %v2708_v63 = vpop.eup %2707 }
0x16f7   :  { %v2058_v9 = vadd.f32 1.0, %v2708_v63 }
0x16f8   :  { %v2710_v2 = vpop.eup %2709 }
0x16f9   :  { %v2059_v10 = vadd.f32 1.0, %v2710_v2  ;;  %v2060_v46 = vmul.f32 %v2058_v9, %v2044_v3 }
0x16fb   :  { %v2061_v11 = vmul.f32 %v2059_v10, %v2045_v4 }
0x16fd   :  { %v2062_v19 = vpack.c.bf16 %v2061_v11, %v2060_v46 }
0x16ff   :  { %2592 = vmatmul.mubr.bf16.vlgmr.msra.gmra.mrb[20].mxu1 %v2062_v19 }
0x17d2   :  { %v2145_v12 = vpop.f32.mrb[20].mxu1 }
0x17d3   :  { %v2152_v39 = vadd.f32 %v2145_v12, %v3174_v59  ;;  %v2593_v13 = vpop.f32.mrb[21].mxu1 }
0x17d4   :  { %v2148_v14 = vpop.f32.mrb[22].mxu1 }
0x17d5   :  { %v2153_v15 = vadd.f32 %v2148_v14, %v3177_v45  ;;  %v2594_v16 = vpop.f32.mrb[23].mxu1  ;;  %v2158_v21 = vadd.f32 %v2157_v50, %v2152_v39 }
0x17d7   :  { %v2161_v18 = vsel %vm50_vm0, %v2158_v21, 0.0  ;;  %v2159_v23 = vadd.f32 %v2157_v50, %v2153_v15 }
0x17d8   :  { %2162 = vadd.xlane.f32.xlu1 %v2161_v18 }
0x17d9   :  { %v2164_v24 = vsel %vm50_vm0, %v2159_v23, 0.0 }
0x17da   :  { %2165 = vadd.xlane.f32.xlu0 %v2164_v24 }
0x1865   :  { %v2163_v8 = vpop.xlane.xlu1 %2162 }
0x1866   :  { %v2167_v27 = vmul.f32 0.03125, %v2163_v8 }
0x1867   :  { %v2166_v29 = vpop.xlane.xlu0 %2165 }
0x1868   :  { %v2169_v36 = vsub.f32 %v2158_v21, %v2167_v27  ;;  %v2168_v60 = vmul.f32 0.03125, %v2166_v29 }
0x186a   :  { %v2170_v49 = vsub.f32 %v2159_v23, %v2168_v60  ;;  %v2171_v59 = vmul.f32 %v2169_v36, %v2169_v36 }
0x186c   :  { %v2173_v38 = vsel %vm50_vm0, %v2171_v59, 0.0  ;;  %v2172_v30 = vmul.f32 %v2170_v49, %v2170_v49 }
0x186d   :  { %2174 = vadd.xlane.f32.xlu0 %v2173_v38 }
0x186e   :  { %v2176_v45 = vsel %vm50_vm0, %v2172_v30, 0.0 }
0x186f   :  { %2177 = vadd.xlane.f32.xlu1 %v2176_v45 }
0x1883   :  { %2194 = vrot.lane.b32.xlu0 %v2190_v54, %s2739_s0  ;;  %s2715_s0 = scalar_lea.vmem %s2268_s5, 256 }
0x1884   :  { %p2716_p0 = scmp.ne.s32.totalorder %s2268_s5, %s2715_s0  ;;  %p2721_p2 = scmp.lt.s32.totalorder %s2715_s0, %s2715_s0 }
0x1886   :  { %p2722_p3 = por %p2721_p2, %p2720_p1 }
0x1888   :  { %p2723_p4 = pnand %p2722_p3, %p2716_p0 }
0x18fa   :  { %v2175_v5 = vpop.xlane.xlu0 %2174 }
0x18fb   :  { %v2179_v33 = vmul.f32 0.03125, %v2175_v5 }
0x18fc   :  { %v2178_v61 = vpop.xlane.xlu1 %2177 }
0x18fd   :  { %v2181_v34 = vadd.f32 1e-05, %v2179_v33  ;;  %v2180_v1 = vmul.f32 0.03125, %v2178_v61 }
0x18fe   :  { %v2195_v43 = vpop.permute.xlu0 %2194 }
0x18ff   :  { %2711 = vrsqrt.f32 %v2181_v34  ;;  %v2182_v35 = vadd.f32 1e-05, %v2180_v1 }
0x1901   :  { %2713 = vrsqrt.f32 %v2182_v35 }
0x1909   :  { %v2712_v37 = vpop.eup %2711 }
0x190a   :  { %v2185_v40 = vmul.f32 %v2712_v37, %v2169_v36 }
0x190b   :  { %v2714_v22 = vpop.eup %2713 }
0x190c   :  { %v2186_v62 = vmul.f32 %v2714_v22, %v2170_v49  ;;  %v2191_v42 = vmul.f32 %v2190_v54, %v2185_v40 }
0x190e   :  { %v2192_v20 = vmul.f32 %v2190_v54, %v2186_v62  ;;  %v2197_v44 = vadd.f32 %v2195_v43, %v2191_v42 }
0x1910   :  { %v2198_v47 = vadd.f32 %v2195_v43, %v2192_v20 }
0x1912   :  { %v2199_v48 = vpack.c.bf16 %v2198_v47, %v2197_v44 }
0x1914   :  { %2600 = vmatmul.mubr.msk.bf16.vlgmr.msra.gmra.mrb[40].mxu0 %vm50_vm0, %v2199_v48 }
0x19e7   :  { %v2253_v51 = vpop.f32.mrb[40].mxu0 }
0x19e8   :  { %2260 = vst [vmem:[#allocation2] sm:$0xff] %v2253_v51  ;;  %v2601_v52 = vpop.f32.mrb[41].mxu0 }
0x19e9   :  { %v2256_v6 = vpop.f32.mrb[42].mxu0 }
0x19ea   :  { %2261 = vst [vmem:[#allocation2 + $0x8] sm:$0xff] %v2256_v6  ;;  %v2602_v53 = vpop.f32.mrb[43].mxu0 }
0x19eb   :  { %2726 = shalt.err (!%p2723_p4)
}
0x19ec   :  { %s2727_s1 = scalar_lea.hbm %s3276_s6, 256 }
0x19ed   :  { %p2728_p5 = scmp.ne.s32.totalorder %s3276_s6, %s2727_s1  ;;  %p2731_p6 = scmp.lt.u32.totalorder %s2727_s1, %s3276_s6 }
0x19ef   :  { %p2733_p7 = pnand %p2731_p6, %p2728_p5 }
0x19f1   :  { %2736 = shalt.err (!%p2733_p7)
}
0x19f2   :  { %s2749_s15 = smov 128   ;;  %s2750_s23 = smov 8  }
0x19f3   :  { %2273 = dma.vmem_to_hbm [thread:$0]  %s2268_s5, 256, %s3276_s6, [#allocation3], %s2749_s15, %s2749_s15, %s2750_s23  }
0x19f4   :  { %2737 = dma.done.wait [#allocation3], 256  }
0x19f5   :  { %2738 = vsyncadd [#allocation3], 4294967040 }
0x19f6   :  { %2277 = vsyncpa [#allocation3], 1 }

</bundles_post_ra>
